<compile_context>
chip_gen: v6e
topology: v6e:2x2x1
jax: 0.10.0
libtpu: 0.0.40
codegen_flags: <defaults>
</compile_context>

<pallas_src>
import functools

import jax
import jax.numpy as jnp
from jax import lax
from jax.experimental import pallas as pl
from jax.experimental.pallas import tpu as pltpu


def _pick_tile(n, candidates):
    """Largest candidate tile that evenly divides n (n is pre-padded to 128)."""
    for c in candidates:
        if c <= n and n % c == 0:
            return c
    return n


# ---------------------------------------------------------------------------
# One-time preprocessing (hoisted out of the per-forward path).
# ---------------------------------------------------------------------------
def gcn_model_vae_prepare(x, adj, w1, w2, w3, *,
                          compute_dtype=jnp.bfloat16, align=128):
    """Cast adj/x/W1 to the compute dtype, fuse [W2 | W3] into one weight, and
    zero-pad N up to a multiple of `align`.  Do this ONCE and reuse the result
    across forward passes (the cast alone would otherwise cost ~6*N^2 bytes of
    HBM traffic per forward)."""
    n, f = x.shape
    h1 = w1.shape[1]
    h2 = w2.shape[1]
    assert adj.shape == (n, n)
    assert w1.shape == (f, h1) and w2.shape == (h1, h2) and w3.shape == (h1, h2)

    pad_n = -(-n // align) * align
    x_c = x.astype(compute_dtype)
    adj_c = adj.astype(compute_dtype)
    if pad_n != n:
        # Zero padding is exact: padded rows/cols contribute nothing and the
        # padded output rows/cols are sliced away in the forward wrapper.
        x_c = jnp.pad(x_c, ((0, pad_n - n), (0, 0)))
        adj_c = jnp.pad(adj_c, ((0, pad_n - n), (0, pad_n - n)))
    w1_c = w1.astype(compute_dtype)
    w23_c = jnp.concatenate([w2, w3], axis=1).astype(compute_dtype)
    return dict(x=x_c, adj=adj_c, w1=w1_c, w23=w23_c, n=n)


# ---------------------------------------------------------------------------
# Path 1: fully-fused single kernel, all operands resident (small graphs).
# ---------------------------------------------------------------------------
def _fused_forward_kernel(x_ref, adj_ref, w1_ref, w23_ref,
                          recon_ref, mu_ref, logvar_ref, *, h2):
    cdt = adj_ref.dtype
    adj = adj_ref[...]
    sup1 = jnp.dot(x_ref[...], w1_ref[...],
                   preferred_element_type=jnp.float32).astype(cdt)
    h1 = jnp.maximum(
        jnp.dot(adj, sup1, preferred_element_type=jnp.float32), 0.0)
    sup2 = jnp.dot(h1.astype(cdt), w23_ref[...],
                   preferred_element_type=jnp.float32).astype(cdt)
    mu_logvar = jnp.dot(adj, sup2, preferred_element_type=jnp.float32)
    mu = mu_logvar[:, :h2]
    mu_ref[...] = mu
    logvar_ref[...] = mu_logvar[:, h2:]
    # Eval-mode z == mu; decode straight from the f32 mu (no bf16 re-cast).
    recon_ref[...] = lax.dot_general(
        mu, mu, dimension_numbers=(((1,), (1,)), ((), ())),
        preferred_element_type=jnp.float32)


def _fused_forward(x_c, adj_c, w1_c, w23_c, h2):
    pad_n, f = x_c.shape
    h1 = w1_c.shape[1]
    kernel = functools.partial(_fused_forward_kernel, h2=h2)
    return pl.pallas_call(
        kernel,
        out_shape=(
            jax.ShapeDtypeStruct((pad_n, pad_n), jnp.float32),   # recon
            jax.ShapeDtypeStruct((pad_n, h2), jnp.float32),      # mu
            jax.ShapeDtypeStruct((pad_n, h2), jnp.float32),      # logvar
        ),
        in_specs=[
            pl.BlockSpec((pad_n, f), lambda: (0, 0)),
            pl.BlockSpec((pad_n, pad_n), lambda: (0, 0)),
            pl.BlockSpec((f, h1), lambda: (0, 0)),
            pl.BlockSpec((h1, 2 * h2), lambda: (0, 0)),
        ],
        out_specs=(
            pl.BlockSpec((pad_n, pad_n), lambda: (0, 0)),
            pl.BlockSpec((pad_n, h2), lambda: (0, 0)),
            pl.BlockSpec((pad_n, h2), lambda: (0, 0)),
        ),
        # Footprint is dominated by adj (bf16) + recon (f32) ~ 6*N^2 bytes;
        # 40 MiB is comfortably under v7x's 64 MiB physical VMEM.
        compiler_params=pltpu.CompilerParams(
            vmem_limit_bytes=40 * 1024 * 1024),
    )(x_c, adj_c, w1_c, w23_c)


# ---------------------------------------------------------------------------
# Path 2: tiled / pipelined kernels (large graphs).
# ---------------------------------------------------------------------------
def _xw_kernel(x_ref, w_ref, o_ref):
    o_ref[...] = jnp.dot(x_ref[...], w_ref[...],
                         preferred_element_type=jnp.float32).astype(o_ref.dtype)


def _xw_matmul(x_c, w_c, *, block_m):
    """support1 = x @ W1 ; row-tiled, W1 resident."""
    pad_n, f = x_c.shape
    cols = w_c.shape[1]
    return pl.pallas_call(
        _xw_kernel,
        out_shape=jax.ShapeDtypeStruct((pad_n, cols), x_c.dtype),
        grid=(pad_n // block_m,),
        in_specs=[
            pl.BlockSpec((block_m, f), lambda i: (i, 0)),
            pl.BlockSpec((f, cols), lambda i: (0, 0)),
        ],
        out_specs=pl.BlockSpec((block_m, cols), lambda i: (i, 0)),
        compiler_params=pltpu.CompilerParams(
            dimension_semantics=("parallel",)),
    )(x_c, w_c)


def _gcn_layer1_kernel(adj_ref, sup1_ref, w23_ref, out_ref, acc_ref, *, block_k):
    """acc = adj @ sup1 (k-accumulated); finalize: out = relu(acc) @ [W2|W3]."""
    k = pl.program_id(1)

    @pl.when(k == 0)
    def _():
        acc_ref[...] = jnp.zeros_like(acc_ref)

    off = pl.multiple_of(k * block_k, block_k)
    acc_ref[...] += jnp.dot(adj_ref[...], sup1_ref[pl.ds(off, block_k), :],
                            preferred_element_type=jnp.float32)

    @pl.when(k == pl.num_programs(1) - 1)
    def _():
        h1 = jnp.maximum(acc_ref[...], 0.0).astype(w23_ref.dtype)
        out_ref[...] = jnp.dot(
            h1, w23_ref[...],
            preferred_element_type=jnp.float32).astype(out_ref.dtype)


def _gcn_layer1(adj_c, sup1, w23_c, *, block_m, block_k):
    pad_n = adj_c.shape[0]
    h1 = sup1.shape[1]
    out_c = w23_c.shape[1]
    kernel = functools.partial(_gcn_layer1_kernel, block_k=block_k)
    return pl.pallas_call(
        kernel,
        out_shape=jax.ShapeDtypeStruct((pad_n, out_c), adj_c.dtype),
        grid=(pad_n // block_m, pad_n // block_k),
        in_specs=[
            pl.BlockSpec((block_m, block_k), lambda i, k: (i, k)),   # adj stream
            pl.BlockSpec((pad_n, h1), lambda i, k: (0, 0)),          # sup1 resident
            pl.BlockSpec((h1, out_c), lambda i, k: (0, 0)),          # W23 resident
        ],
        out_specs=pl.BlockSpec((block_m, out_c), lambda i, k: (i, 0)),
        scratch_shapes=[pltpu.VMEM((block_m, h1), jnp.float32)],
        compiler_params=pltpu.CompilerParams(
            dimension_semantics=("parallel", "arbitrary")),
    )(adj_c, sup1, w23_c)


def _gcn_layer2_kernel(adj_ref, sup2_ref, out_ref, *, block_k):
    """[mu | logvar] = adj @ sup2 ; f32 output accumulated in place."""
    k = pl.program_id(1)

    @pl.when(k == 0)
    def _():
        out_ref[...] = jnp.zeros_like(out_ref)

    off = pl.multiple_of(k * block_k, block_k)
    out_ref[...] += jnp.dot(adj_ref[...], sup2_ref[pl.ds(off, block_k), :],
                            preferred_element_type=jnp.float32)


def _gcn_layer2(adj_c, sup2, *, block_m, block_k):
    pad_n = adj_c.shape[0]
    cols = sup2.shape[1]
    kernel = functools.partial(_gcn_layer2_kernel, block_k=block_k)
    return pl.pallas_call(
        kernel,
        out_shape=jax.ShapeDtypeStruct((pad_n, cols), jnp.float32),
        grid=(pad_n // block_m, pad_n // block_k),
        in_specs=[
            pl.BlockSpec((block_m, block_k), lambda i, k: (i, k)),   # adj stream
            pl.BlockSpec((pad_n, cols), lambda i, k: (0, 0)),        # sup2 resident
        ],
        out_specs=pl.BlockSpec((block_m, cols), lambda i, k: (i, 0)),
        compiler_params=pltpu.CompilerParams(
            dimension_semantics=("parallel", "arbitrary")),
    )(adj_c, sup2)


def _decoder_kernel(z_ref, o_ref, *, block_r, block_c, h2):
    """recon[i-block, j-block] = mu_i . mu_j ; z (= [mu|logvar]) is resident."""
    off_i = pl.multiple_of(pl.program_id(0) * block_r, block_r)
    off_j = pl.multiple_of(pl.program_id(1) * block_c, block_c)
    zi = z_ref[pl.ds(off_i, block_r), :][:, :h2]
    zj = z_ref[pl.ds(off_j, block_c), :][:, :h2]
    o_ref[...] = lax.dot_general(
        zi, zj, dimension_numbers=(((1,), (1,)), ((), ())),
        preferred_element_type=jnp.float32)


def _inner_product_decode(mu_logvar, h2, *, block_r, block_c):
    pad_n, cols = mu_logvar.shape
    kernel = functools.partial(_decoder_kernel, block_r=block_r,
                               block_c=block_c, h2=h2)
    return pl.pallas_call(
        kernel,
        out_shape=jax.ShapeDtypeStruct((pad_n, pad_n), jnp.float32),
        grid=(pad_n // block_r, pad_n // block_c),
        in_specs=[pl.BlockSpec((pad_n, cols), lambda i, j: (0, 0))],  # resident
        out_specs=pl.BlockSpec((block_r, block_c), lambda i, j: (i, j)),
        compiler_params=pltpu.CompilerParams(
            dimension_semantics=("parallel", "parallel")),
    )(mu_logvar)


# ---------------------------------------------------------------------------
# Forward dispatcher.
# ---------------------------------------------------------------------------
def gcn_model_vae_forward(prepared, *, block_m=None, block_k=None,
                          block_r=None, block_c=None,
                          fused_vmem_budget=24 * 1024 * 1024,
                          force_path=None):
    x_c, adj_c = prepared["x"], prepared["adj"]
    w1_c, w23_c = prepared["w1"], prepared["w23"]
    n = prepared["n"]
    pad_n, f = x_c.shape
    h1 = w1_c.shape[1]
    h2 = w23_c.shape[1] // 2

    # Rough fused-path VMEM footprint: adj (compute dtype) + recon (f32)
    # dominate; supports / weights / intermediates are a few hundred bytes/row.
    itemsize = jnp.dtype(adj_c.dtype).itemsize
    fused_bytes = (pad_n * pad_n * (itemsize + 4)
                   + pad_n * (2 * f + 16 * (h1 + 2 * h2)))
    use_fused = fused_bytes <= fused_vmem_budget
    if force_path == "fused":
        use_fused = True
    elif force_path == "tiled":
        use_fused = False

    if use_fused:
        recon_p, mu_p, logvar_p = _fused_forward(x_c, adj_c, w1_c, w23_c, h2)
    else:
        # pad_n is a multiple of 128, so the 128 fallback always divides.
        # (On v7x, keep pad_n // block_m >= 2 so both TensorCores get rows.)
        if block_m is None:
            block_m = _pick_tile(pad_n, (512, 256, 128))
        if block_k is None:
            block_k = _pick_tile(pad_n, (2048, 1024, 512, 256, 128))
        if block_r is None:
            block_r = _pick_tile(pad_n, (512, 256, 128))
        if block_c is None:
            block_c = _pick_tile(pad_n, (512, 256, 128))

        sup1 = _xw_matmul(x_c, w1_c, block_m=block_m)
        # Layer 1 + support2 fused: sup2 = relu(adj @ sup1) @ [W2 | W3]
        sup2 = _gcn_layer1(adj_c, sup1, w23_c, block_m=block_m, block_k=block_k)
        # Layer 2/3 fused: [mu | logvar] = adj @ sup2  (f32, in-place accum)
        mu_logvar_p = _gcn_layer2(adj_c, sup2, block_m=block_m, block_k=block_k)
        # Decoder reads f32 mu straight out of the resident [mu|logvar] slab.
        recon_p = _inner_product_decode(mu_logvar_p, h2,
                                        block_r=block_r, block_c=block_c)
        mu_p = mu_logvar_p[:, :h2]
        logvar_p = mu_logvar_p[:, h2:]

    recon = recon_p if pad_n == n else recon_p[:n, :n]
    mu = mu_p if pad_n == n else mu_p[:n]
    logvar = logvar_p if pad_n == n else logvar_p[:n]
    z = mu   # eval-mode reparameterize: z aliases mu (no extra writeback)
    return recon, z, mu, logvar


# ---------------------------------------------------------------------------
# Demo / self-test.
# ---------------------------------------------------------------------------
def _glorot(key, shape):
    fan_in, fan_out = shape
    limit = (6.0 / (fan_in + fan_out)) ** 0.5
    return jax.random.uniform(key, shape, jnp.float32, -limit, limit)


def _make_inputs(key, n, feat, h1, h2):
    kx, kadj, k1, k2, k3 = jax.random.split(key, 5)
    x = jax.random.normal(kx, (n, feat), jnp.float32)
    # Symmetric, degree-normalized adjacency (typical GCN preprocessing).
    a_raw = (jax.random.uniform(kadj, (n, n)) < 0.05).astype(jnp.float32)
    a_sym = jnp.clip(a_raw + a_raw.T, 0.0, 1.0) + jnp.eye(n, dtype=jnp.float32)
    d_inv_sqrt = 1.0 / jnp.sqrt(jnp.sum(a_sym, axis=1))
    adj = a_sym * d_inv_sqrt[:, None] * d_inv_sqrt[None, :]
    w1 = _glorot(k1, (feat, h1))
    w2 = _glorot(k2, (h1, h2))
    w3 = _glorot(k3, (h1, h2))
    return x, adj, w1, w2, w3


def _reference(x, adj, w1, w2, w3):
    h1 = jnp.maximum(adj @ (x @ w1), 0.0)
    mu = adj @ (h1 @ w2)
    logvar = adj @ (h1 @ w3)
    return mu @ mu.T, mu, logvar


def _check(recon, z, mu, logvar, x, adj, w1, w2, w3):
    recon_ref, mu_ref, logvar_ref = _reference(x, adj, w1, w2, w3)
    # bf16 adj/x inputs with f32 accumulation -> relaxed tolerances.
    assert jnp.allclose(mu, mu_ref, atol=2e-2, rtol=2e-2)
    assert jnp.allclose(logvar, logvar_ref, atol=2e-2, rtol=2e-2)
    assert jnp.allclose(z, mu_ref, atol=2e-2, rtol=2e-2)
    assert jnp.allclose(recon, recon_ref, atol=5e-2, rtol=5e-2)


if __name__ == "__main__":
    FEAT, H1, H2 = 64, 32, 16
    key = jax.random.PRNGKey(0)
    k_small, k_tiled = jax.random.split(key)

    # 1) Small graph (N=256): single fully-fused, all-resident kernel.
    x, adj, w1, w2, w3 = _make_inputs(k_small, 256, FEAT, H1, H2)
    prepared = gcn_model_vae_prepare(x, adj, w1, w2, w3)   # one-time cast/pad
    out = gcn_model_vae_forward(prepared)
    jax.block_until_ready(out)
    _check(*out, x, adj, w1, w2, w3)

    # 2) Tiled / pipelined path (forced) at a non-128-multiple N to also
    #    exercise the zero-padding route; small 128 blocks so the K-reduction
    #    accumulator grid (3x3) is genuinely iterated at this size.
    x2, adj2, w12, w22, w32 = _make_inputs(k_tiled, 300, FEAT, H1, H2)
    prepared2 = gcn_model_vae_prepare(x2, adj2, w12, w22, w32)
    out2 = gcn_model_vae_forward(prepared2, force_path="tiled",
                                 block_m=128, block_k=128,
                                 block_r=128, block_c=128)
    jax.block_until_ready(out2)
    _check(*out2, x2, adj2, w12, w22, w32)

    print("KERNEL_OK")
</pallas_src>

<mosaic_0001>
module attributes {stable_mosaic.version = 11 : i64} {
  func.func @_fused_forward_kernel(%arg0: memref<256x64xbf16, #tpu.memory_space<vmem>>, %arg1: memref<256x256xbf16, #tpu.memory_space<vmem>>, %arg2: memref<64x32xbf16, #tpu.memory_space<vmem>>, %arg3: memref<32x32xbf16, #tpu.memory_space<vmem>>, %arg4: memref<256x256xf32, #tpu.memory_space<vmem>>, %arg5: memref<256x16xf32, #tpu.memory_space<vmem>>, %arg6: memref<256x16xf32, #tpu.memory_space<vmem>>) attributes {dimension_semantics = [], scalar_prefetch = 0 : i64, scratch_operands = 0 : i64, tpu.core_type = #tpu.core_type<tc>} {
    %c0 = arith.constant 0 : index
    %c0_0 = arith.constant 0 : index
    %0 = vector.load %arg1[%c0, %c0_0] : memref<256x256xbf16, #tpu.memory_space<vmem>>, vector<256x256xbf16>
    %c0_1 = arith.constant 0 : index
    %c0_2 = arith.constant 0 : index
    %1 = vector.load %arg0[%c0_1, %c0_2] : memref<256x64xbf16, #tpu.memory_space<vmem>>, vector<256x64xbf16>
    %c0_3 = arith.constant 0 : index
    %c0_4 = arith.constant 0 : index
    %2 = vector.load %arg2[%c0_3, %c0_4] : memref<64x32xbf16, #tpu.memory_space<vmem>>, vector<64x32xbf16>
    %cst = arith.constant dense<0.000000e+00> : vector<256x32xf32>
    %3 = tpu.matmul %1, %2, %cst {dimension_numbers = #tpu.dot_dimension_numbers<[1], [0], [0], [1], [0, 0, 1, 1], [], []>} : vector<256x64xbf16>, vector<64x32xbf16>, vector<256x32xf32> -> vector<256x32xf32>
    %4 = arith.truncf %3 : vector<256x32xf32> to vector<256x32xbf16>
    %cst_5 = arith.constant dense<0.000000e+00> : vector<256x32xf32>
    %5 = tpu.matmul %0, %4, %cst_5 {dimension_numbers = #tpu.dot_dimension_numbers<[1], [0], [0], [1], [0, 0, 1, 1], [], []>} : vector<256x256xbf16>, vector<256x32xbf16>, vector<256x32xf32> -> vector<256x32xf32>
    %cst_6 = arith.constant 0.000000e+00 : f32
    %6 = vector.broadcast %cst_6 : f32 to vector<256x32xf32>
    %7 = arith.maximumf %5, %6 : vector<256x32xf32>
    %8 = arith.truncf %7 : vector<256x32xf32> to vector<256x32xbf16>
    %c0_7 = arith.constant 0 : index
    %c0_8 = arith.constant 0 : index
    %9 = vector.load %arg3[%c0_7, %c0_8] : memref<32x32xbf16, #tpu.memory_space<vmem>>, vector<32x32xbf16>
    %cst_9 = arith.constant dense<0.000000e+00> : vector<256x32xf32>
    %10 = tpu.matmul %8, %9, %cst_9 {dimension_numbers = #tpu.dot_dimension_numbers<[1], [0], [0], [1], [0, 0, 1, 1], [], []>} : vector<256x32xbf16>, vector<32x32xbf16>, vector<256x32xf32> -> vector<256x32xf32>
    %11 = arith.truncf %10 : vector<256x32xf32> to vector<256x32xbf16>
    %cst_10 = arith.constant dense<0.000000e+00> : vector<256x32xf32>
    %12 = tpu.matmul %0, %11, %cst_10 {dimension_numbers = #tpu.dot_dimension_numbers<[1], [0], [0], [1], [0, 0, 1, 1], [], []>} : vector<256x256xbf16>, vector<256x32xbf16>, vector<256x32xf32> -> vector<256x32xf32>
    %13 = vector.extract_strided_slice %12 {offsets = [0, 0], sizes = [256, 16], strides = [1, 1]} : vector<256x32xf32> to vector<256x16xf32>
    %c0_11 = arith.constant 0 : index
    %c0_12 = arith.constant 0 : index
    %14 = vector.load %arg5[%c0_11, %c0_12] : memref<256x16xf32, #tpu.memory_space<vmem>>, vector<256x16xf32>
    tpu.vector_store %arg5[%c0_11, %c0_12], %13 {strides = array<i32>} : memref<256x16xf32, #tpu.memory_space<vmem>>, vector<256x16xf32>,
    %15 = vector.extract_strided_slice %12 {offsets = [0, 16], sizes = [256, 16], strides = [1, 1]} : vector<256x32xf32> to vector<256x16xf32>
    %c0_13 = arith.constant 0 : index
    %c0_14 = arith.constant 0 : index
    %16 = vector.load %arg6[%c0_13, %c0_14] : memref<256x16xf32, #tpu.memory_space<vmem>>, vector<256x16xf32>
    tpu.vector_store %arg6[%c0_13, %c0_14], %15 {strides = array<i32>} : memref<256x16xf32, #tpu.memory_space<vmem>>, vector<256x16xf32>,
    %cst_15 = arith.constant dense<0.000000e+00> : vector<256x256xf32>
    %17 = tpu.matmul %13, %13, %cst_15 {dimension_numbers = #tpu.dot_dimension_numbers<[1], [1], [0], [0], [0, 0, 1, 0], [], []>} : vector<256x16xf32>, vector<256x16xf32>, vector<256x256xf32> -> vector<256x256xf32>
    %c0_16 = arith.constant 0 : index
    %c0_17 = arith.constant 0 : index
    %18 = vector.load %arg4[%c0_16, %c0_17] : memref<256x256xf32, #tpu.memory_space<vmem>>, vector<256x256xf32>
    tpu.vector_store %arg4[%c0_16, %c0_17], %17 {strides = array<i32>} : memref<256x256xf32, #tpu.memory_space<vmem>>, vector<256x256xf32>,
    return
  }
}

</mosaic_0001>

<bundles_post_ra>
// kernel: tpu_custom_call.1
= control target key start
LH: loop header
LB: loop body
LE: loop exit
PB: predicated region body
PF: predicated region fallthrough
CT: control target
= control target key end

     0   :  { %12 = vsyncpa [#allocation3], 0  ;;  %s3426_s0 = inlined_call_operand.vmem [shape: bf16[256,64], index: 0, kind: input, shape index: {}]   ;;  %s3427_s1 = inlined_call_operand.hbm [shape: bf16[256,256], index: 1, kind: input, shape index: {}]   ;;  %s3428_s2 = inlined_call_operand.vmem [shape: bf16[64,32], index: 2, kind: input, shape index: {}]   ;;  %s3429_s3 = inlined_call_operand.vmem [shape: bf16[32,32], index: 3, kind: input, shape index: {}]   ;;  %s3430_s4 = inlined_call_operand.hbm [shape: f32[256,256], index: 4, kind: output, shape index: {0}]   ;;  %s3431_s5 = inlined_call_operand.vmem [shape: f32[256,16], index: 5, kind: output, shape index: {1}]   ;;  %s3432_s6 = inlined_call_operand.vmem [shape: f32[256,16], index: 6, kind: output, shape index: {2}]  }
   0x1   :  { %13 = vsyncpa [#allocation4], 0  ;;  %s2534_s21 = smov [#allocation2]  }
   0x2   :  { %s21_s22 = sshll.u32 %s2534_s21, 4  ;;  %s22_s22 = int_to_ptr.vmem [resolvable:$true] %s21_s22 }
   0x3   :  { %s2498_s23 = scalar_lea.vmem %s22_s22, 4096  ;;  %p2503_p1 = scmp.lt.s32.totalorder %s22_s22, %s22_s22 }
   0x4   :  { %p2499_p0 = scmp.ne.s32.totalorder %s22_s22, %s2498_s23  ;;  %p2504_p2 = scmp.lt.s32.totalorder %s2498_s23, %s2498_s23 }
   0x6   :  { %p2505_p3 = por %p2504_p2, %p2503_p1 }
   0x8   :  { %p2506_p4 = pnand %p2505_p3, %p2499_p0 }
   0xa   :  { %2509 = shalt.err (!%p2506_p4)
}
   0xb   :  { %s2535_s24 = smov 128   ;;  %s2536_s25 = smov 8  }
   0xc   :  { %27 = dma.hbm_to_vmem [thread:$0]  %s3427_s1, 4096, %s22_s22, [#allocation3], %s2535_s24, %s2535_s24, %s2536_s25  }
   0xd   :  { %2530 = dma.done.wait [#allocation3], 4096  }
   0xe   :  { %2531 = vsyncadd [#allocation3], 4294963200  ;;  %v2420_v0 = vld [vmem:[%s3428_s2 + $0x18] sm:$0xff]   ;;  %v2421_v1 = vld [vmem:[%s3428_s2 + $0x10] sm:$0xff]   ;;  %vm212_vm0 = vcmask 523264   ;;  %vm823_vm1 = vcmask 261120  }
   0xf   :  { %2321 = vmatprep.subr.bf16.mxu0 %v2420_v0  ;;  %v2422_v2 = vld [vmem:[%s3428_s2 + $0x8] sm:$0xff]   ;;  %v2424_v3 = vld [vmem:[%s3426_s0] sm:$0xff]   ;;  %v2426_v6 = vld [vmem:[%s3426_s0 + $0x10] sm:$0xff]   ;;  %vm1210_vm2 = vcmask 130048   ;;  %s2537_s20 = smov 112  }
  0x10   :  { %2322 = vmatpush3.bf16.msra.mxu0 %v2420_v0  ;;  %2329 = vmatprep.mubr.msk.bf16.mxu0 %vm212_vm0, %v2424_v3  ;;  %v2423_v4 = vld [vmem:[%s3428_s2] sm:$0xff]   ;;  %v2425_v5 = vld [vmem:[%s3426_s0 + $0x8] sm:$0xff]   ;;  %v2427_v7 = vld [vmem:[%s3426_s0 + $0x18] sm:$0xff]  }
  0x11   :  { %2323 = vmatprep.subr.bf16.mxu0 %v2421_v1  ;;  %v2428_v8 = vld [vmem:[%s3426_s0 + $0x20] sm:$0xff]   ;;  %v2429_v9 = vld [vmem:[%s3426_s0 + $0x28] sm:$0xff]   ;;  %v2430_v10 = vld [vmem:[%s3426_s0 + $0x30] sm:$0xff]  }
  0x12   :  { %v2431_v11 = vld [vmem:[%s3426_s0 + $0x38] sm:$0xff]   ;;  %v2432_v12 = vld [vmem:[%s3426_s0 + $0x40] sm:$0xff]   ;;  %v2433_v13 = vld [vmem:[%s3426_s0 + $0x48] sm:$0xff]  }
  0x13   :  { %v2434_v14 = vld [vmem:[%s3426_s0 + $0x50] sm:$0xff]   ;;  %v2435_v15 = vld [vmem:[%s3426_s0 + $0x58] sm:$0xff]   ;;  %v2436_v16 = vld [vmem:[%s3426_s0 + $0x60] sm:$0xff]  }
  0x14   :  { %2324 = vmatpush3.bf16.msra.mxu0 %v2421_v1  ;;  %v2437_v17 = vld [vmem:[%s3426_s0 + $0x68] sm:$0xff]   ;;  %v2438_v18 = vld [vmem:[%s3426_s0 + $0x70] sm:$0xff]   ;;  %v2439_v19 = vld [vmem:[%s3426_s0 + $0x78] sm:$0xff]  }
  0x15   :  { %2325 = vmatprep.subr.bf16.mxu0 %v2422_v2  ;;  %v2655_v20 = vld [vmem:[#allocation2 + $0x4] ss:$8 sps:$4 sm:$0xff]   ;;  %v2657_v21 = vld [vmem:[#allocation2 + $0x14] ss:$8 sps:$4 sm:$0xff]  }
  0x16   :  { %638 = vmatprep.mubr.bf16.mxu1 %v2657_v21 }
  0x18   :  { %2326 = vmatpush3.bf16.msra.mxu0 %v2422_v2 }
  0x19   :  { %2327 = vmatprep.subr.bf16.mxu0 %v2423_v4 }
  0x1c   :  { %2328 = vmatpush3.bf16.msra.mxu0 %v2423_v4 }
  0x1f   :  { %2330 = vmatmul.mubr.msk.bf16.vlgmr.msra.gmra.mxu0 %vm212_vm0, %v2425_v5 }
  0x20   :  { %2333 = vmatprep.mubr.msk.bf16.mxu0 %vm212_vm0, %v2426_v6  ;;  %v2671_v6 = vld [vmem:[#allocation2] ss:$8 sps:$4 sm:$0xff]  }
  0x27   :  { %2334 = vmatmul.mubr.msk.bf16.gmra.mxu0 %vm212_vm0, %v2427_v7  ;;  %v2673_v7 = vld [vmem:[#allocation2 + $0x10] ss:$8 sps:$4 sm:$0xff]  }
  0x28   :  { %2337 = vmatprep.mubr.msk.bf16.mxu0 %vm212_vm0, %v2428_v8  ;;  %v2675_v8 = vld [vmem:[#allocation2 + $0x24] ss:$8 sps:$4 sm:$0xff]  }
  0x2f   :  { %2338 = vmatmul.mubr.msk.bf16.gmra.mxu0 %vm212_vm0, %v2429_v9  ;;  %v2680_v9 = vld [vmem:[#allocation2 + $0x20] ss:$8 sps:$4 sm:$0xff]  }
  0x30   :  { %2341 = vmatprep.mubr.msk.bf16.mxu0 %vm212_vm0, %v2430_v10  ;;  %v2682_v10 = vld [vmem:[#allocation2 + $0x34] ss:$8 sps:$4 sm:$0xff]  }
  0x37   :  { %2342 = vmatmul.mubr.msk.bf16.gmra.mxu0 %vm212_vm0, %v2431_v11  ;;  %v2686_v11 = vld [vmem:[#allocation2 + $0x30] ss:$8 sps:$4 sm:$0xff]  }
  0x38   :  { %2345 = vmatprep.mubr.msk.bf16.mxu0 %vm212_vm0, %v2432_v12  ;;  %v2688_v12 = vld [vmem:[#allocation2 + $0x44] ss:$8 sps:$4 sm:$0xff]  }
  0x3f   :  { %2346 = vmatmul.mubr.msk.bf16.gmra.mxu0 %vm212_vm0, %v2433_v13  ;;  %v2692_v13 = vld [vmem:[#allocation2 + $0x40] ss:$8 sps:$4 sm:$0xff]  }
  0x40   :  { %2349 = vmatprep.mubr.msk.bf16.mxu0 %vm212_vm0, %v2434_v14  ;;  %v2694_v14 = vld [vmem:[#allocation2 + $0x54] ss:$8 sps:$4 sm:$0xff]  }
  0x47   :  { %2350 = vmatmul.mubr.msk.bf16.gmra.mxu0 %vm212_vm0, %v2435_v15  ;;  %v2698_v15 = vld [vmem:[#allocation2 + $0x50] ss:$8 sps:$4 sm:$0xff]  }
  0x48   :  { %2353 = vmatprep.mubr.msk.bf16.mxu0 %vm212_vm0, %v2436_v16  ;;  %v2700_v16 = vld [vmem:[#allocation2 + $0x64] ss:$8 sps:$4 sm:$0xff]  }
  0x4f   :  { %2354 = vmatmul.mubr.msk.bf16.gmra.mxu0 %vm212_vm0, %v2437_v17  ;;  %v2704_v17 = vld [vmem:[#allocation2 + $0x60] ss:$8 sps:$4 sm:$0xff]  }
  0x50   :  { %2357 = vmatprep.mubr.msk.bf16.mxu0 %vm212_vm0, %v2438_v18  ;;  %v2706_v18 = vld [vmem:[#allocation2 + $0x74] ss:$8 sps:$4 sm:$0xff]  }
  0x57   :  { %2358 = vmatmul.mubr.msk.bf16.gmra.mxu0 %vm212_vm0, %v2439_v19  ;;  %v2710_v19 = vld [vmem:[#allocation2 + $0x70] ss:$8 sps:$4 sm:$0xff]  }
  0x58   :  { %630 = vmatprep.mubr.bf16.mxu0 %v2655_v20 }
  0xdf   :  { %v2331_v22 = vpop.f32.mrf.mxu0 }
  0xe1   :  { %v2661_v23 = vpop.f32.mrf.mxu0 }
  0xe3   :  { %v2332_v24 = vpop.f32.mrf.mxu0 }
  0xe4   :  { %v2663_v25 = vpack.c.bf16 %v2332_v24, %v2331_v22  ;;  %v2712_v22 = vld [vmem:[#allocation2 + $0x84] ss:$8 sps:$4 sm:$0xff]   ;;  %v2718_v24 = vld [vmem:[#allocation2 + $0x94] ss:$8 sps:$4 sm:$0xff]  }
  0xe5   :  { %v2665_v26 = vpop.f32.mrf.mxu0 }
  0xe6   :  { %v422_v5 = vpack.c.bf16 %v2665_v26, %v2661_v23  ;;  %v2716_v23 = vld [vmem:[#allocation2 + $0x80] ss:$8 sps:$4 sm:$0xff]   ;;  %v2724_v26 = vld [vmem:[#allocation2 + $0xa4] ss:$8 sps:$4 sm:$0xff]  }
  0xe7   :  { %v2335_v27 = vpop.f32.mrf.mxu0 }
  0xe9   :  { %v311_v28 = vpop.f32.mrf.mxu0 }
  0xeb   :  { %v2336_v29 = vpop.f32.mrf.mxu0 }
  0xec   :  { %v425_v30 = vpack.c.bf16 %v2336_v29, %v2335_v27  ;;  %v2728_v27 = vld [vmem:[#allocation2 + $0xa0] ss:$8 sps:$4 sm:$0xff]   ;;  %v2733_v29 = vld [vmem:[#allocation2 + $0xb4] ss:$8 sps:$4 sm:$0xff]  }
  0xed   :  { %v314_v31 = vpop.f32.mrf.mxu0 }
  0xee   :  { %v424_v2 = vpack.c.bf16 %v314_v31, %v311_v28  ;;  %v2488_v28 = vld [vmem:[%s3429_s3 + $0x8] sm:$0xff]   ;;  %v2740_v31 = vld [vmem:[#allocation2 + $0xb0] ss:$8 sps:$4 sm:$0xff]  }
  0xef   :  { %v2339_v32 = vpop.f32.mrf.mxu0 }
  0xf1   :  { %v327_v33 = vpop.f32.mrf.mxu0 }
  0xf3   :  { %v2340_v34 = vpop.f32.mrf.mxu0 }
  0xf4   :  { %v427_v61 = vpack.c.bf16 %v2340_v34, %v2339_v32  ;;  %v2742_v32 = vld [vmem:[#allocation2 + $0xc4] ss:$8 sps:$4 sm:$0xff]   ;;  %v2748_v34 = vld [vmem:[#allocation2 + $0xd4] ss:$8 sps:$4 sm:$0xff]  }
  0xf5   :  { %v330_v35 = vpop.f32.mrf.mxu0 }
  0xf6   :  { %v426_v63 = vpack.c.bf16 %v330_v35, %v327_v33  ;;  %v2746_v33 = vld [vmem:[#allocation2 + $0xc0] ss:$8 sps:$4 sm:$0xff]   ;;  %v2752_v35 = vld [vmem:[#allocation2 + $0xd0] ss:$8 sps:$4 sm:$0xff]  }
  0xf7   :  { %v2343_v36 = vpop.f32.mrf.mxu0  ;;  %3438 = vst [vmem:[#allocation8_spill] sm:$0xff] %v2752_v35 }
  0xf9   :  { %v343_v37 = vpop.f32.mrf.mxu0 }
  0xfb   :  { %v2344_v38 = vpop.f32.mrf.mxu0 }
  0xfc   :  { %v429_v56 = vpack.c.bf16 %v2344_v38, %v2343_v36  ;;  %v2754_v36 = vld [vmem:[#allocation2 + $0xe4] ss:$8 sps:$4 sm:$0xff]   ;;  %v2760_v38 = vld [vmem:[#allocation2 + $0xf4] ss:$8 sps:$4 sm:$0xff]  }
  0xfd   :  { %v346_v39 = vpop.f32.mrf.mxu0  ;;  %3439 = vst [vmem:[#allocation9_spill] sm:$0xff] %v2754_v36  ;;  %3441 = vst [vmem:[#allocation11_spill] sm:$0xff] %v2760_v38 }
  0xfe   :  { %v428_v59 = vpack.c.bf16 %v346_v39, %v343_v37  ;;  %v2758_v37 = vld [vmem:[#allocation2 + $0xe0] ss:$8 sps:$4 sm:$0xff]   ;;  %v2764_v39 = vld [vmem:[#allocation2 + $0xf0] ss:$8 sps:$4 sm:$0xff]  }
  0xff   :  { %v2347_v40 = vpop.f32.mrf.mxu0  ;;  %3440 = vst [vmem:[#allocation10_spill] sm:$0xff] %v2758_v37  ;;  %3442 = vst [vmem:[#allocation12_spill] sm:$0xff] %v2764_v39 }
 0x101   :  { %v359_v41 = vpop.f32.mrf.mxu0 }
 0x103   :  { %v2348_v42 = vpop.f32.mrf.mxu0 }
 0x104   :  { %v431_v3 = vpack.c.bf16 %v2348_v42, %v2347_v40 }
 0x105   :  { %v362_v43 = vpop.f32.mrf.mxu0 }
 0x106   :  { %v430_v4 = vpack.c.bf16 %v362_v43, %v359_v41 }
 0x107   :  { %v2351_v44 = vpop.f32.mrf.mxu0 }
 0x109   :  { %v375_v45 = vpop.f32.mrf.mxu0 }
 0x10b   :  { %v2352_v46 = vpop.f32.mrf.mxu0 }
 0x10c   :  { %v433_v0 = vpack.c.bf16 %v2352_v46, %v2351_v44 }
 0x10d   :  { %v378_v47 = vpop.f32.mrf.mxu0 }
 0x10e   :  { %v432_v1 = vpack.c.bf16 %v378_v47, %v375_v45 }
 0x10f   :  { %v2355_v48 = vpop.f32.mrf.mxu0 }
 0x111   :  { %v391_v49 = vpop.f32.mrf.mxu0 }
 0x113   :  { %v2356_v50 = vpop.f32.mrf.mxu0 }
 0x114   :  { %v435_v60 = vpack.c.bf16 %v2356_v50, %v2355_v48 }
 0x115   :  { %v394_v51 = vpop.f32.mrf.mxu0 }
 0x116   :  { %v434_v62 = vpack.c.bf16 %v394_v51, %v391_v49 }
 0x117   :  { %v2359_v52 = vpop.f32.mrf.mxu0 }
 0x119   :  { %v407_v53 = vpop.f32.mrf.mxu0 }
 0x11b   :  { %v2360_v54 = vpop.f32.mrf.mxu0 }
 0x11c   :  { %v437_v55 = vpack.c.bf16 %v2360_v54, %v2359_v52 }
 0x11d   :  { %v410_v57 = vpop.f32.mrf.mxu0 }
 0x11e   :  { %v436_v58 = vpack.c.bf16 %v410_v57, %v407_v53  ;;  %1983 = vmatprep.subr.bf16.mxu0 %v437_v55  ;;  %2397 = vmatprep.subr.bf16.mxu1 %v437_v55 }
 0x11f   :  { %1984 = vmatpush3.bf16.msra.mxu0 %v429_v56  ;;  %2405 = vmatpush3.bf16.msra.mxu1 %v429_v56 }
 0x120   :  { %1985 = vmatprep.subr.bf16.mxu0 %v436_v58  ;;  %2398 = vmatprep.subr.bf16.mxu1 %v436_v58 }
 0x123   :  { %1986 = vmatpush3.bf16.msra.mxu0 %v428_v59  ;;  %2406 = vmatpush3.bf16.msra.mxu1 %v428_v59 }
 0x124   :  { %1987 = vmatprep.subr.bf16.mxu0 %v435_v60  ;;  %2399 = vmatprep.subr.bf16.mxu1 %v435_v60 }
 0x127   :  { %1988 = vmatpush3.bf16.msra.mxu0 %v427_v61  ;;  %2407 = vmatpush3.bf16.msra.mxu1 %v427_v61 }
 0x128   :  { %1989 = vmatprep.subr.bf16.mxu0 %v434_v62  ;;  %2400 = vmatprep.subr.bf16.mxu1 %v434_v62 }
 0x12b   :  { %1990 = vmatpush3.bf16.msra.mxu0 %v426_v63  ;;  %2408 = vmatpush3.bf16.msra.mxu1 %v426_v63 }
 0x12c   :  { %1991 = vmatprep.subr.bf16.mxu0 %v433_v0  ;;  %2401 = vmatprep.subr.bf16.mxu1 %v433_v0 }
 0x12f   :  { %1992 = vmatpush3.bf16.msra.mxu0 %v425_v30  ;;  %2409 = vmatpush3.bf16.msra.mxu1 %v425_v30  ;;  %v2489_v30 = vld [vmem:[%s3429_s3] sm:$0xff]  }
 0x130   :  { %1993 = vmatprep.subr.bf16.mxu0 %v432_v1  ;;  %2402 = vmatprep.subr.bf16.mxu1 %v432_v1 }
 0x133   :  { %1994 = vmatpush3.bf16.msra.mxu0 %v424_v2  ;;  %2410 = vmatpush3.bf16.msra.mxu1 %v424_v2 }
 0x134   :  { %1995 = vmatprep.subr.bf16.mxu0 %v431_v3  ;;  %2403 = vmatprep.subr.bf16.mxu1 %v431_v3 }
 0x137   :  { %1996 = vmatpush3.bf16.msra.mxu0 %v2663_v25  ;;  %2411 = vmatpush3.bf16.msra.mxu1 %v2663_v25  ;;  %v2722_v25 = vld [vmem:[#allocation2 + $0x90] ss:$8 sps:$4 sm:$0xff]  }
 0x138   :  { %1997 = vmatprep.subr.bf16.mxu0 %v430_v4  ;;  %2404 = vmatprep.subr.bf16.mxu1 %v430_v4 }
 0x13b   :  { %1998 = vmatpush3.bf16.msra.mxu0 %v422_v5  ;;  %2412 = vmatpush3.bf16.msra.mxu1 %v422_v5 }
 0x13c   :  { %2361 = vmatprep.subr.bf16.mxu0 %v2488_v28 }
 0x13e   :  { %631 = vmatmul.mubr.bf16.vlgmr.msra.gmra.mxu0 %v2671_v6  ;;  %639 = vmatmul.mubr.bf16.vlgmr.msra.gmra.mxu1 %v2673_v7 }
 0x13f   :  { %646 = vmatprep.mubr.bf16.mxu1 %v2675_v8  ;;  %2362 = vmatpush3.bf16.msra.mxu0 %v2488_v28 }
 0x140   :  { %2363 = vmatprep.subr.bf16.mxu0 %v2489_v30 }
 0x143   :  { %2364 = vmatpush3.bf16.msra.mxu0 %v2489_v30 }
 0x146   :  { %647 = vmatmul.mubr.bf16.gmra.mxu1 %v2680_v9 }
 0x147   :  { %654 = vmatprep.mubr.bf16.mxu1 %v2682_v10 }
 0x14e   :  { %655 = vmatmul.mubr.bf16.gmra.mxu1 %v2686_v11 }
 0x14f   :  { %662 = vmatprep.mubr.bf16.mxu1 %v2688_v12 }
 0x156   :  { %663 = vmatmul.mubr.bf16.gmra.mxu1 %v2692_v13 }
 0x157   :  { %670 = vmatprep.mubr.bf16.mxu1 %v2694_v14 }
 0x15e   :  { %671 = vmatmul.mubr.bf16.gmra.mxu1 %v2698_v15 }
 0x15f   :  { %678 = vmatprep.mubr.bf16.mxu1 %v2700_v16 }
 0x166   :  { %679 = vmatmul.mubr.bf16.gmra.mxu1 %v2704_v17 }
 0x167   :  { %686 = vmatprep.mubr.bf16.mxu1 %v2706_v18 }
 0x16e   :  { %687 = vmatmul.mubr.bf16.gmra.mxu1 %v2710_v19 }
 0x16f   :  { %694 = vmatprep.mubr.bf16.mxu1 %v2712_v22 }
 0x176   :  { %695 = vmatmul.mubr.bf16.gmra.mxu1 %v2716_v23 }
 0x177   :  { %702 = vmatprep.mubr.bf16.mxu1 %v2718_v24 }
 0x17e   :  { %703 = vmatmul.mubr.bf16.gmra.mxu1 %v2722_v25 }
 0x17f   :  { %710 = vmatprep.mubr.bf16.mxu1 %v2724_v26 }
 0x186   :  { %711 = vmatmul.mubr.bf16.gmra.mxu1 %v2728_v27 }
 0x187   :  { %718 = vmatprep.mubr.bf16.mxu1 %v2733_v29 }
 0x18e   :  { %719 = vmatmul.mubr.bf16.gmra.mxu1 %v2740_v31 }
 0x18f   :  { %726 = vmatprep.mubr.bf16.mxu1 %v2742_v32 }
 0x196   :  { %727 = vmatmul.mubr.bf16.gmra.mxu1 %v2746_v33 }
 0x197   :  { %734 = vmatprep.mubr.bf16.mxu1 %v2748_v34 }
 0x19e   :  { %735 = vmatmul.mubr.bf16.gmra.mxu1 %v2752_v35 }
 0x19f   :  { %742 = vmatprep.mubr.bf16.mxu1 %v2754_v36 }
 0x1a6   :  { %743 = vmatmul.mubr.bf16.gmra.mxu1 %v2758_v37 }
 0x1a7   :  { %750 = vmatprep.mubr.bf16.mxu1 %v2760_v38 }
 0x1ae   :  { %751 = vmatmul.mubr.bf16.gmra.mxu1 %v2764_v39 }
 0x1fe   :  { %v1999_v40 = vpop.f32.mrf.mxu0  ;;  %v2005_v41 = vpop.f32.mrf.mxu1 }
 0x200   :  { %v2000_v42 = vpop.f32.mrf.mxu0  ;;  %v2006_v43 = vpop.f32.mrf.mxu1 }
 0x201   :  { %v2001_v44 = vadd.f32 %v2000_v42, %v1999_v40  ;;  %v2007_v47 = vadd.f32 %v2006_v43, %v2005_v41 }
 0x202   :  { %v2002_v45 = vpop.f32.mrf.mxu0  ;;  %v2008_v46 = vpop.f32.mrf.mxu1 }
 0x203   :  { %v759_v50 = vmax.f32 %v2001_v44, 0.0  ;;  %v761_v54 = vmax.f32 %v2007_v47, 0.0 }
 0x204   :  { %v2003_v48 = vpop.f32.mrf.mxu0  ;;  %v2009_v49 = vpop.f32.mrf.mxu1 }
 0x205   :  { %v2004_v51 = vadd.f32 %v2003_v48, %v2002_v45  ;;  %v2010_v52 = vadd.f32 %v2009_v49, %v2008_v46 }
 0x206   :  { %v2011_v53 = vpop.f32.mrf.mxu1 }
 0x207   :  { %v760_v55 = vmax.f32 %v2004_v51, 0.0  ;;  %v762_v56 = vmax.f32 %v2010_v52, 0.0 }
 0x208   :  { %v2012_v57 = vpop.f32.mrf.mxu1 }
 0x209   :  { %v791_v58 = vpack.c.bf16 %v760_v55, %v759_v50  ;;  %v792_v59 = vpack.c.bf16 %v762_v56, %v761_v54  ;;  %v2013_v61 = vadd.f32 %v2012_v57, %v2011_v53 }
 0x20a   :  { %v2014_v60 = vpop.f32.mrf.mxu1 }
 0x20b   :  { %2365 = vmatprep.mubr.msk.bf16.mxu0 %vm823_vm1, %v791_v58  ;;  %v763_v1 = vmax.f32 %v2013_v61, 0.0 }
 0x20c   :  { %v2015_v62 = vpop.f32.mrf.mxu1  ;;  %2366 = vmatmul.mubr.msk.bf16.vlgmr.msra.gmra.mxu0 %vm823_vm1, %v792_v59 }
 0x20d   :  { %v2016_v63 = vadd.f32 %v2015_v62, %v2014_v60 }
 0x20e   :  { %v2017_v0 = vpop.f32.mrf.mxu1 }
 0x20f   :  { %v764_v2 = vmax.f32 %v2016_v63, 0.0 }
 0x210   :  { %v2018_v3 = vpop.f32.mrf.mxu1 }
 0x211   :  { %v793_v4 = vpack.c.bf16 %v764_v2, %v763_v1  ;;  %v2019_v28 = vadd.f32 %v2018_v3, %v2017_v0 }
 0x212   :  { %v2020_v5 = vpop.f32.mrf.mxu1 }
 0x213   :  { %2369 = vmatprep.mubr.msk.bf16.mxu0 %vm823_vm1, %v793_v4  ;;  %v765_v42 = vmax.f32 %v2019_v28, 0.0 }
 0x214   :  { %v2021_v30 = vpop.f32.mrf.mxu1 }
 0x215   :  { %v2022_v40 = vadd.f32 %v2021_v30, %v2020_v5 }
 0x216   :  { %v2023_v41 = vpop.f32.mrf.mxu1 }
 0x217   :  { %v766_v43 = vmax.f32 %v2022_v40, 0.0 }
 0x218   :  { %v2024_v44 = vpop.f32.mrf.mxu1 }
 0x219   :  { %v794_v45 = vpack.c.bf16 %v766_v43, %v765_v42  ;;  %v2025_v47 = vadd.f32 %v2024_v44, %v2023_v41 }
 0x21a   :  { %v2026_v46 = vpop.f32.mrf.mxu1 }
 0x21b   :  { %2370 = vmatmul.mubr.msk.bf16.gmra.mxu0 %vm823_vm1, %v794_v45  ;;  %v767_v51 = vmax.f32 %v2025_v47, 0.0 }
 0x21c   :  { %v2027_v48 = vpop.f32.mrf.mxu1 }
 0x21d   :  { %v2028_v49 = vadd.f32 %v2027_v48, %v2026_v46 }
 0x21e   :  { %v2029_v50 = vpop.f32.mrf.mxu1 }
 0x21f   :  { %v768_v52 = vmax.f32 %v2028_v49, 0.0 }
 0x220   :  { %v2030_v53 = vpop.f32.mrf.mxu1 }
 0x221   :  { %v795_v54 = vpack.c.bf16 %v768_v52, %v767_v51  ;;  %v2031_v56 = vadd.f32 %v2030_v53, %v2029_v50 }
 0x222   :  { %v2032_v55 = vpop.f32.mrf.mxu1 }
 0x223   :  { %2373 = vmatprep.mubr.msk.bf16.mxu0 %vm823_vm1, %v795_v54  ;;  %v769_v60 = vmax.f32 %v2031_v56, 0.0 }
 0x224   :  { %v2033_v57 = vpop.f32.mrf.mxu1 }
 0x225   :  { %v2034_v58 = vadd.f32 %v2033_v57, %v2032_v55 }
 0x226   :  { %v2035_v59 = vpop.f32.mrf.mxu1 }
 0x227   :  { %v770_v61 = vmax.f32 %v2034_v58, 0.0 }
 0x228   :  { %v2036_v62 = vpop.f32.mrf.mxu1 }
 0x229   :  { %v796_v63 = vpack.c.bf16 %v770_v61, %v769_v60  ;;  %v2037_v1 = vadd.f32 %v2036_v62, %v2035_v59 }
 0x22a   :  { %v2038_v0 = vpop.f32.mrf.mxu1 }
 0x22b   :  { %2374 = vmatmul.mubr.msk.bf16.gmra.mxu0 %vm823_vm1, %v796_v63  ;;  %v771_v5 = vmax.f32 %v2037_v1, 0.0 }
 0x22c   :  { %v2039_v2 = vpop.f32.mrf.mxu1 }
 0x22d   :  { %v2040_v3 = vadd.f32 %v2039_v2, %v2038_v0 }
 0x22e   :  { %v2041_v4 = vpop.f32.mrf.mxu1 }
 0x22f   :  { %v772_v28 = vmax.f32 %v2040_v3, 0.0 }
 0x230   :  { %v2042_v30 = vpop.f32.mrf.mxu1 }
 0x231   :  { %v797_v40 = vpack.c.bf16 %v772_v28, %v771_v5  ;;  %v2043_v42 = vadd.f32 %v2042_v30, %v2041_v4 }
 0x232   :  { %v2044_v41 = vpop.f32.mrf.mxu1 }
 0x233   :  { %2377 = vmatprep.mubr.msk.bf16.mxu0 %vm823_vm1, %v797_v40  ;;  %v773_v46 = vmax.f32 %v2043_v42, 0.0 }
 0x234   :  { %v2045_v43 = vpop.f32.mrf.mxu1 }
 0x235   :  { %v2046_v44 = vadd.f32 %v2045_v43, %v2044_v41 }
 0x236   :  { %v2047_v45 = vpop.f32.mrf.mxu1 }
 0x237   :  { %v774_v47 = vmax.f32 %v2046_v44, 0.0 }
 0x238   :  { %v2048_v48 = vpop.f32.mrf.mxu1 }
 0x239   :  { %v798_v49 = vpack.c.bf16 %v774_v47, %v773_v46  ;;  %v2049_v51 = vadd.f32 %v2048_v48, %v2047_v45 }
 0x23a   :  { %v2050_v50 = vpop.f32.mrf.mxu1 }
 0x23b   :  { %2378 = vmatmul.mubr.msk.bf16.gmra.mxu0 %vm823_vm1, %v798_v49  ;;  %v775_v55 = vmax.f32 %v2049_v51, 0.0 }
 0x23c   :  { %v2051_v52 = vpop.f32.mrf.mxu1 }
 0x23d   :  { %v2052_v53 = vadd.f32 %v2051_v52, %v2050_v50 }
 0x23e   :  { %v2053_v54 = vpop.f32.mrf.mxu1 }
 0x23f   :  { %v776_v56 = vmax.f32 %v2052_v53, 0.0 }
 0x240   :  { %v2054_v57 = vpop.f32.mrf.mxu1 }
 0x241   :  { %v799_v58 = vpack.c.bf16 %v776_v56, %v775_v55  ;;  %v2055_v60 = vadd.f32 %v2054_v57, %v2053_v54 }
 0x242   :  { %v2056_v59 = vpop.f32.mrf.mxu1 }
 0x243   :  { %2381 = vmatprep.mubr.msk.bf16.mxu0 %vm823_vm1, %v799_v58  ;;  %v777_v0 = vmax.f32 %v2055_v60, 0.0 }
 0x244   :  { %v2057_v61 = vpop.f32.mrf.mxu1 }
 0x245   :  { %v2058_v62 = vadd.f32 %v2057_v61, %v2056_v59 }
 0x246   :  { %v2059_v63 = vpop.f32.mrf.mxu1 }
 0x247   :  { %v778_v1 = vmax.f32 %v2058_v62, 0.0 }
 0x248   :  { %v2060_v2 = vpop.f32.mrf.mxu1 }
 0x249   :  { %v800_v3 = vpack.c.bf16 %v778_v1, %v777_v0  ;;  %v2061_v5 = vadd.f32 %v2060_v2, %v2059_v63 }
 0x24a   :  { %v2062_v4 = vpop.f32.mrf.mxu1 }
 0x24b   :  { %2382 = vmatmul.mubr.msk.bf16.gmra.mxu0 %vm823_vm1, %v800_v3  ;;  %v779_v41 = vmax.f32 %v2061_v5, 0.0 }
 0x24c   :  { %v2063_v28 = vpop.f32.mrf.mxu1 }
 0x24d   :  { %v2064_v30 = vadd.f32 %v2063_v28, %v2062_v4 }
 0x24e   :  { %v2065_v40 = vpop.f32.mrf.mxu1 }
 0x24f   :  { %v780_v42 = vmax.f32 %v2064_v30, 0.0 }
 0x250   :  { %v2066_v43 = vpop.f32.mrf.mxu1 }
 0x251   :  { %v801_v44 = vpack.c.bf16 %v780_v42, %v779_v41  ;;  %v2067_v46 = vadd.f32 %v2066_v43, %v2065_v40 }
 0x252   :  { %v2068_v45 = vpop.f32.mrf.mxu1 }
 0x253   :  { %2385 = vmatprep.mubr.msk.bf16.mxu0 %vm823_vm1, %v801_v44  ;;  %v781_v50 = vmax.f32 %v2067_v46, 0.0 }
 0x254   :  { %v2069_v47 = vpop.f32.mrf.mxu1 }
 0x255   :  { %v2070_v48 = vadd.f32 %v2069_v47, %v2068_v45 }
 0x256   :  { %v2071_v49 = vpop.f32.mrf.mxu1 }
 0x257   :  { %v782_v51 = vmax.f32 %v2070_v48, 0.0 }
 0x258   :  { %v2072_v52 = vpop.f32.mrf.mxu1 }
 0x259   :  { %v802_v53 = vpack.c.bf16 %v782_v51, %v781_v50  ;;  %v2073_v55 = vadd.f32 %v2072_v52, %v2071_v49 }
 0x25a   :  { %v2074_v54 = vpop.f32.mrf.mxu1 }
 0x25b   :  { %2386 = vmatmul.mubr.msk.bf16.gmra.mxu0 %vm823_vm1, %v802_v53  ;;  %v783_v59 = vmax.f32 %v2073_v55, 0.0 }
 0x25c   :  { %v2075_v56 = vpop.f32.mrf.mxu1 }
 0x25d   :  { %v2076_v57 = vadd.f32 %v2075_v56, %v2074_v54 }
 0x25e   :  { %v2077_v58 = vpop.f32.mrf.mxu1 }
 0x25f   :  { %v784_v60 = vmax.f32 %v2076_v57, 0.0 }
 0x260   :  { %v2078_v61 = vpop.f32.mrf.mxu1 }
 0x261   :  { %v803_v62 = vpack.c.bf16 %v784_v60, %v783_v59  ;;  %v2079_v0 = vadd.f32 %v2078_v61, %v2077_v58 }
 0x262   :  { %v2080_v63 = vpop.f32.mrf.mxu1 }
 0x263   :  { %2389 = vmatprep.mubr.msk.bf16.mxu0 %vm823_vm1, %v803_v62  ;;  %v785_v4 = vmax.f32 %v2079_v0, 0.0 }
 0x264   :  { %v2081_v1 = vpop.f32.mrf.mxu1 }
 0x265   :  { %v2082_v2 = vadd.f32 %v2081_v1, %v2080_v63 }
 0x266   :  { %v2083_v3 = vpop.f32.mrf.mxu1 }
 0x267   :  { %v786_v5 = vmax.f32 %v2082_v2, 0.0 }
 0x268   :  { %v2084_v28 = vpop.f32.mrf.mxu1 }
 0x269   :  { %v804_v30 = vpack.c.bf16 %v786_v5, %v785_v4  ;;  %v2085_v41 = vadd.f32 %v2084_v28, %v2083_v3 }
 0x26a   :  { %v2086_v40 = vpop.f32.mrf.mxu1 }
 0x26b   :  { %2390 = vmatmul.mubr.msk.bf16.gmra.mxu0 %vm823_vm1, %v804_v30  ;;  %v787_v45 = vmax.f32 %v2085_v41, 0.0 }
 0x26c   :  { %v2087_v42 = vpop.f32.mrf.mxu1 }
 0x26d   :  { %v2088_v43 = vadd.f32 %v2087_v42, %v2086_v40 }
 0x26e   :  { %v2089_v44 = vpop.f32.mrf.mxu1 }
 0x26f   :  { %v788_v46 = vmax.f32 %v2088_v43, 0.0 }
 0x270   :  { %v2090_v47 = vpop.f32.mrf.mxu1 }
 0x271   :  { %v805_v48 = vpack.c.bf16 %v788_v46, %v787_v45  ;;  %v2091_v50 = vadd.f32 %v2090_v47, %v2089_v44 }
 0x272   :  { %v2092_v49 = vpop.f32.mrf.mxu1 }
 0x273   :  { %2393 = vmatprep.mubr.msk.bf16.mxu0 %vm823_vm1, %v805_v48  ;;  %v789_v53 = vmax.f32 %v2091_v50, 0.0 }
 0x274   :  { %v2093_v51 = vpop.f32.mrf.mxu1 }
 0x275   :  { %v2094_v52 = vadd.f32 %v2093_v51, %v2092_v49 }
 0x277   :  { %v790_v54 = vmax.f32 %v2094_v52, 0.0 }
 0x279   :  { %v806_v55 = vpack.c.bf16 %v790_v54, %v789_v53 }
 0x27b   :  { %2394 = vmatmul.mubr.msk.bf16.gmra.mxu0 %vm823_vm1, %v806_v55 }
 0x27c   :  { %1081 = vmatprep.mubr.bf16.mxu0 %v2655_v20 }
 0x2cc   :  { %v2367_v56 = vpop.f32.mrf.mxu0 }
 0x2ce   :  { %v906_v57 = vpop.f32.mrf.mxu0 }
 0x2d0   :  { %v2368_v58 = vpop.f32.mrf.mxu0 }
 0x2d1   :  { %v1034_v59 = vpack.c.bf16 %v2368_v58, %v2367_v56 }
 0x2d2   :  { %v909_v60 = vpop.f32.mrf.mxu0 }
 0x2d3   :  { %v1033_v61 = vpack.c.bf16 %v909_v60, %v906_v57 }
 0x2db   :  { %v2371_v62 = vpop.f32.mrf.mxu0 }
 0x2dd   :  { %v922_v63 = vpop.f32.mrf.mxu0 }
 0x2df   :  { %v2372_v0 = vpop.f32.mrf.mxu0 }
 0x2e0   :  { %v1036_v1 = vpack.c.bf16 %v2372_v0, %v2371_v62 }
 0x2e1   :  { %v925_v2 = vpop.f32.mrf.mxu0 }
 0x2e2   :  { %v1035_v3 = vpack.c.bf16 %v925_v2, %v922_v63 }
 0x2eb   :  { %v2375_v4 = vpop.f32.mrf.mxu0 }
 0x2ed   :  { %v938_v5 = vpop.f32.mrf.mxu0 }
 0x2ef   :  { %v2376_v28 = vpop.f32.mrf.mxu0 }
 0x2f0   :  { %v1038_v39 = vpack.c.bf16 %v2376_v28, %v2375_v4 }
 0x2f1   :  { %v941_v30 = vpop.f32.mrf.mxu0 }
 0x2f2   :  { %v1037_v37 = vpack.c.bf16 %v941_v30, %v938_v5 }
 0x2fb   :  { %v2379_v40 = vpop.f32.mrf.mxu0 }
 0x2fd   :  { %v954_v41 = vpop.f32.mrf.mxu0 }
 0x2ff   :  { %v2380_v42 = vpop.f32.mrf.mxu0 }
 0x300   :  { %v1040_v60 = vpack.c.bf16 %v2380_v42, %v2379_v40 }
 0x301   :  { %v957_v20 = vpop.f32.mrf.mxu0 }
 0x302   :  { %v1039_v0 = vpack.c.bf16 %v957_v20, %v954_v41 }
 0x30b   :  { %v2383_v43 = vpop.f32.mrf.mxu0 }
 0x30d   :  { %v970_v44 = vpop.f32.mrf.mxu0 }
 0x30f   :  { %v2384_v45 = vpop.f32.mrf.mxu0 }
 0x310   :  { %v1042_v40 = vpack.c.bf16 %v2384_v45, %v2383_v43 }
 0x311   :  { %v973_v46 = vpop.f32.mrf.mxu0 }
 0x312   :  { %v1041_v42 = vpack.c.bf16 %v973_v46, %v970_v44 }
 0x31b   :  { %v2387_v47 = vpop.f32.mrf.mxu0 }
 0x31d   :  { %v986_v48 = vpop.f32.mrf.mxu0 }
 0x31f   :  { %v2388_v49 = vpop.f32.mrf.mxu0 }
 0x320   :  { %v1044_v36 = vpack.c.bf16 %v2388_v49, %v2387_v47 }
 0x321   :  { %v989_v50 = vpop.f32.mrf.mxu0 }
 0x322   :  { %v1043_v35 = vpack.c.bf16 %v989_v50, %v986_v48 }
 0x32b   :  { %v2391_v51 = vpop.f32.mrf.mxu0 }
 0x32d   :  { %v1002_v52 = vpop.f32.mrf.mxu0 }
 0x32f   :  { %v2392_v53 = vpop.f32.mrf.mxu0 }
 0x330   :  { %v1046_v2 = vpack.c.bf16 %v2392_v53, %v2391_v51 }
 0x331   :  { %v1005_v54 = vpop.f32.mrf.mxu0 }
 0x332   :  { %v1045_v38 = vpack.c.bf16 %v1005_v54, %v1002_v52 }
 0x33b   :  { %v2395_v55 = vpop.f32.mrf.mxu0 }
 0x33d   :  { %v1018_v56 = vpop.f32.mrf.mxu0 }
 0x33f   :  { %v2396_v57 = vpop.f32.mrf.mxu0 }
 0x340   :  { %v1048_v58 = vpack.c.bf16 %v2396_v57, %v2395_v55 }
 0x341   :  { %v1021_v62 = vpop.f32.mrf.mxu0 }
 0x342   :  { %v1047_v63 = vpack.c.bf16 %v1021_v62, %v1018_v56  ;;  %2113 = vmatprep.subr.bf16.mxu0 %v1048_v58 }
 0x343   :  { %2114 = vmatpush3.bf16.msra.mxu0 %v1040_v60 }
 0x344   :  { %2115 = vmatprep.subr.bf16.mxu0 %v1047_v63 }
 0x347   :  { %2116 = vmatpush3.bf16.msra.mxu0 %v1039_v0 }
 0x348   :  { %2117 = vmatprep.subr.bf16.mxu0 %v1046_v2 }
 0x34b   :  { %2118 = vmatpush3.bf16.msra.mxu0 %v1038_v39 }
 0x34c   :  { %2119 = vmatprep.subr.bf16.mxu0 %v1045_v38 }
 0x34f   :  { %2120 = vmatpush3.bf16.msra.mxu0 %v1037_v37 }
 0x350   :  { %2121 = vmatprep.subr.bf16.mxu0 %v1044_v36 }
 0x353   :  { %2122 = vmatpush3.bf16.msra.mxu0 %v1036_v1 }
 0x354   :  { %2123 = vmatprep.subr.bf16.mxu0 %v1043_v35 }
 0x357   :  { %2124 = vmatpush3.bf16.msra.mxu0 %v1035_v3 }
 0x358   :  { %2125 = vmatprep.subr.bf16.mxu0 %v1042_v40 }
 0x35b   :  { %2126 = vmatpush3.bf16.msra.mxu0 %v1034_v59 }
 0x35c   :  { %2127 = vmatprep.subr.bf16.mxu0 %v1041_v42 }
 0x35f   :  { %2128 = vmatpush3.bf16.msra.mxu0 %v1033_v61 }
 0x362   :  { %1082 = vmatmul.mubr.bf16.vlgmr.msra.gmra.mxu0 %v2671_v6  ;;  %v3444_v6 = vld [vmem:[#allocation9_spill] sm:$0xff] }
 0x363   :  { %1089 = vmatprep.mubr.bf16.mxu0 %v2657_v21  ;;  %v3443_v21 = vld [vmem:[#allocation8_spill] sm:$0xff] }
 0x36a   :  { %1090 = vmatmul.mubr.bf16.gmra.mxu0 %v2673_v7  ;;  %v3445_v7 = vld [vmem:[#allocation10_spill] sm:$0xff] }
 0x36b   :  { %1097 = vmatprep.mubr.bf16.mxu0 %v2675_v8  ;;  %v3446_v8 = vld [vmem:[#allocation11_spill] sm:$0xff] }
 0x372   :  { %1098 = vmatmul.mubr.bf16.gmra.mxu0 %v2680_v9  ;;  %v3447_v9 = vld [vmem:[#allocation12_spill] sm:$0xff] }
 0x373   :  { %1105 = vmatprep.mubr.bf16.mxu0 %v2682_v10 }
 0x37a   :  { %1106 = vmatmul.mubr.bf16.gmra.mxu0 %v2686_v11 }
 0x37b   :  { %1113 = vmatprep.mubr.bf16.mxu0 %v2688_v12 }
 0x382   :  { %1114 = vmatmul.mubr.bf16.gmra.mxu0 %v2692_v13 }
 0x383   :  { %1121 = vmatprep.mubr.bf16.mxu0 %v2694_v14 }
 0x38a   :  { %1122 = vmatmul.mubr.bf16.gmra.mxu0 %v2698_v15 }
 0x38b   :  { %1129 = vmatprep.mubr.bf16.mxu0 %v2700_v16 }
 0x392   :  { %1130 = vmatmul.mubr.bf16.gmra.mxu0 %v2704_v17 }
 0x393   :  { %1137 = vmatprep.mubr.bf16.mxu0 %v2706_v18 }
 0x39a   :  { %1138 = vmatmul.mubr.bf16.gmra.mxu0 %v2710_v19 }
 0x39b   :  { %1145 = vmatprep.mubr.bf16.mxu0 %v2712_v22 }
 0x3a2   :  { %1146 = vmatmul.mubr.bf16.gmra.mxu0 %v2716_v23 }
 0x3a3   :  { %1153 = vmatprep.mubr.bf16.mxu0 %v2718_v24 }
 0x3aa   :  { %1154 = vmatmul.mubr.bf16.gmra.mxu0 %v2722_v25 }
 0x3ab   :  { %1161 = vmatprep.mubr.bf16.mxu0 %v2724_v26 }
 0x3b2   :  { %1162 = vmatmul.mubr.bf16.gmra.mxu0 %v2728_v27 }
 0x3b3   :  { %1169 = vmatprep.mubr.bf16.mxu0 %v2733_v29 }
 0x3ba   :  { %1170 = vmatmul.mubr.bf16.gmra.mxu0 %v2740_v31 }
 0x3bb   :  { %1177 = vmatprep.mubr.bf16.mxu0 %v2742_v32 }
 0x3c2   :  { %1178 = vmatmul.mubr.bf16.gmra.mxu0 %v2746_v33 }
 0x3c3   :  { %1185 = vmatprep.mubr.bf16.mxu0 %v2748_v34 }
 0x3ca   :  { %1186 = vmatmul.mubr.bf16.gmra.mxu0 %v3443_v21 }
 0x3cb   :  { %1193 = vmatprep.mubr.bf16.mxu0 %v3444_v6 }
 0x3d2   :  { %1194 = vmatmul.mubr.bf16.gmra.mxu0 %v3445_v7 }
 0x3d3   :  { %1201 = vmatprep.mubr.bf16.mxu0 %v3446_v8 }
 0x3da   :  { %1202 = vmatmul.mubr.bf16.gmra.mxu0 %v3447_v9 }
 0x422   :  { %v2129_v10 = vpop.f32.mrf.mxu0 }
 0x424   :  { %v2130_v11 = vpop.f32.mrf.mxu0 }
 0x425   :  { %v2815_v12 = vadd.f32 %v2130_v11, %v2129_v10 }
 0x426   :  { %v2132_v13 = vpop.f32.mrf.mxu0 }
 0x427   :  { %1211 = vst.msk [vmem:[%s3431_s5] sm:$0xff] %vm1210_vm2, %v2815_v12  ;;  %1275 = vrot.lane.b32.xlu0 %v2815_v12, %s2537_s20  ;;  %2257 = vmatprep.mubr.msk.f32.mxu1 %vm1210_vm2, %v2815_v12 }
 0x428   :  { %v2133_v14 = vpop.f32.mrf.mxu0 }
 0x429   :  { %v2826_v15 = vadd.f32 %v2133_v14, %v2132_v13 }
 0x42a   :  { %v2135_v16 = vpop.f32.mrf.mxu0 }
 0x42b   :  { %1212 = vst.msk [vmem:[%s3431_s5 + $0x8] sm:$0xff] %vm1210_vm2, %v2826_v15  ;;  %1277 = vrot.lane.b32.xlu0 %v2826_v15, %s2537_s20 }
 0x42c   :  { %v2136_v17 = vpop.f32.mrf.mxu0 }
 0x42d   :  { %v2835_v18 = vadd.f32 %v2136_v17, %v2135_v16 }
 0x42e   :  { %v2138_v19 = vpop.f32.mrf.mxu0 }
 0x42f   :  { %1213 = vst.msk [vmem:[%s3431_s5 + $0x10] sm:$0xff] %vm1210_vm2, %v2835_v18  ;;  %1279 = vrot.lane.b32.xlu1 %v2835_v18, %s2537_s20 }
 0x430   :  { %v2139_v22 = vpop.f32.mrf.mxu0 }
 0x431   :  { %v2844_v23 = vadd.f32 %v2139_v22, %v2138_v19 }
 0x432   :  { %v2141_v24 = vpop.f32.mrf.mxu0 }
 0x433   :  { %1214 = vst.msk [vmem:[%s3431_s5 + $0x18] sm:$0xff] %vm1210_vm2, %v2844_v23  ;;  %1281 = vrot.lane.b32.xlu1 %v2844_v23, %s2537_s20 }
 0x434   :  { %v2142_v25 = vpop.f32.mrf.mxu0 }
 0x435   :  { %v2853_v26 = vadd.f32 %v2142_v25, %v2141_v24 }
 0x436   :  { %v2144_v27 = vpop.f32.mrf.mxu0 }
 0x437   :  { %1215 = vst.msk [vmem:[%s3431_s5 + $0x20] sm:$0xff] %vm1210_vm2, %v2853_v26  ;;  %1283 = vrot.lane.b32.xlu0 %v2853_v26, %s2537_s20 }
 0x438   :  { %v2145_v29 = vpop.f32.mrf.mxu0 }
 0x439   :  { %v2862_v31 = vadd.f32 %v2145_v29, %v2144_v27 }
 0x43a   :  { %v2147_v32 = vpop.f32.mrf.mxu0 }
 0x43b   :  { %1216 = vst.msk [vmem:[%s3431_s5 + $0x28] sm:$0xff] %vm1210_vm2, %v2862_v31  ;;  %1285 = vrot.lane.b32.xlu1 %v2862_v31, %s2537_s20 }
 0x43c   :  { %v2148_v33 = vpop.f32.mrf.mxu0 }
 0x43d   :  { %v2871_v34 = vadd.f32 %v2148_v33, %v2147_v32 }
 0x43e   :  { %v2150_v35 = vpop.f32.mrf.mxu0 }
 0x43f   :  { %1217 = vst.msk [vmem:[%s3431_s5 + $0x30] sm:$0xff] %vm1210_vm2, %v2871_v34  ;;  %1287 = vrot.lane.b32.xlu0 %v2871_v34, %s2537_s20 }
 0x440   :  { %v2151_v36 = vpop.f32.mrf.mxu0 }
 0x441   :  { %v2880_v37 = vadd.f32 %v2151_v36, %v2150_v35 }
 0x442   :  { %v2153_v38 = vpop.f32.mrf.mxu0 }
 0x443   :  { %1218 = vst.msk [vmem:[%s3431_s5 + $0x38] sm:$0xff] %vm1210_vm2, %v2880_v37  ;;  %1289 = vrot.lane.b32.xlu1 %v2880_v37, %s2537_s20 }
 0x444   :  { %v2154_v39 = vpop.f32.mrf.mxu0 }
 0x445   :  { %v2889_v59 = vadd.f32 %v2154_v39, %v2153_v38 }
 0x446   :  { %v2156_v61 = vpop.f32.mrf.mxu0 }
 0x447   :  { %1219 = vst.msk [vmem:[%s3431_s5 + $0x40] sm:$0xff] %vm1210_vm2, %v2889_v59  ;;  %1291 = vrot.lane.b32.xlu0 %v2889_v59, %s2537_s20 }
 0x448   :  { %v2157_v1 = vpop.f32.mrf.mxu0 }
 0x449   :  { %v2898_v3 = vadd.f32 %v2157_v1, %v2156_v61 }
 0x44a   :  { %v2159_v4 = vpop.f32.mrf.mxu0 }
 0x44b   :  { %1220 = vst.msk [vmem:[%s3431_s5 + $0x48] sm:$0xff] %vm1210_vm2, %v2898_v3  ;;  %1293 = vrot.lane.b32.xlu1 %v2898_v3, %s2537_s20 }
 0x44c   :  { %v2160_v5 = vpop.f32.mrf.mxu0 }
 0x44d   :  { %v2907_v28 = vadd.f32 %v2160_v5, %v2159_v4 }
 0x44e   :  { %v2162_v30 = vpop.f32.mrf.mxu0 }
 0x44f   :  { %1221 = vst.msk [vmem:[%s3431_s5 + $0x50] sm:$0xff] %vm1210_vm2, %v2907_v28  ;;  %1295 = vrot.lane.b32.xlu0 %v2907_v28, %s2537_s20 }
 0x450   :  { %v2163_v41 = vpop.f32.mrf.mxu0 }
 0x451   :  { %v2916_v20 = vadd.f32 %v2163_v41, %v2162_v30 }
 0x452   :  { %v2165_v43 = vpop.f32.mrf.mxu0 }
 0x453   :  { %1222 = vst.msk [vmem:[%s3431_s5 + $0x58] sm:$0xff] %vm1210_vm2, %v2916_v20  ;;  %1297 = vrot.lane.b32.xlu1 %v2916_v20, %s2537_s20 }
 0x454   :  { %v2166_v44 = vpop.f32.mrf.mxu0 }
 0x455   :  { %v2925_v45 = vadd.f32 %v2166_v44, %v2165_v43 }
 0x456   :  { %v2168_v46 = vpop.f32.mrf.mxu0 }
 0x457   :  { %1223 = vst.msk [vmem:[%s3431_s5 + $0x60] sm:$0xff] %vm1210_vm2, %v2925_v45  ;;  %1299 = vrot.lane.b32.xlu0 %v2925_v45, %s2537_s20 }
 0x458   :  { %v2169_v47 = vpop.f32.mrf.mxu0 }
 0x459   :  { %v2934_v48 = vadd.f32 %v2169_v47, %v2168_v46 }
 0x45a   :  { %v2171_v49 = vpop.f32.mrf.mxu0 }
 0x45b   :  { %1224 = vst.msk [vmem:[%s3431_s5 + $0x68] sm:$0xff] %vm1210_vm2, %v2934_v48  ;;  %1301 = vrot.lane.b32.xlu1 %v2934_v48, %s2537_s20 }
 0x45c   :  { %v2172_v50 = vpop.f32.mrf.mxu0 }
 0x45d   :  { %v2943_v51 = vadd.f32 %v2172_v50, %v2171_v49 }
 0x45e   :  { %v2174_v52 = vpop.f32.mrf.mxu0 }
 0x45f   :  { %1225 = vst.msk [vmem:[%s3431_s5 + $0x70] sm:$0xff] %vm1210_vm2, %v2943_v51  ;;  %1303 = vrot.lane.b32.xlu0 %v2943_v51, %s2537_s20 }
 0x460   :  { %v2175_v53 = vpop.f32.mrf.mxu0 }
 0x461   :  { %v2952_v54 = vadd.f32 %v2175_v53, %v2174_v52 }
 0x462   :  { %v2177_v55 = vpop.f32.mrf.mxu0 }
 0x463   :  { %1226 = vst.msk [vmem:[%s3431_s5 + $0x78] sm:$0xff] %vm1210_vm2, %v2952_v54  ;;  %1305 = vrot.lane.b32.xlu1 %v2952_v54, %s2537_s20 }
 0x464   :  { %v2178_v56 = vpop.f32.mrf.mxu0 }
 0x465   :  { %v2961_v57 = vadd.f32 %v2178_v56, %v2177_v55 }
 0x466   :  { %v2180_v58 = vpop.f32.mrf.mxu0 }
 0x467   :  { %1227 = vst.msk [vmem:[%s3431_s5 + $0x80] sm:$0xff] %vm1210_vm2, %v2961_v57  ;;  %1307 = vrot.lane.b32.xlu0 %v2961_v57, %s2537_s20 }
 0x468   :  { %v2181_v60 = vpop.f32.mrf.mxu0 }
 0x469   :  { %v2970_v62 = vadd.f32 %v2181_v60, %v2180_v58 }
 0x46a   :  { %v2183_v63 = vpop.f32.mrf.mxu0 }
 0x46b   :  { %1228 = vst.msk [vmem:[%s3431_s5 + $0x88] sm:$0xff] %vm1210_vm2, %v2970_v62  ;;  %1309 = vrot.lane.b32.xlu1 %v2970_v62, %s2537_s20 }
 0x46c   :  { %v2184_v0 = vpop.f32.mrf.mxu0 }
 0x46d   :  { %v2979_v2 = vadd.f32 %v2184_v0, %v2183_v63 }
 0x46e   :  { %v2186_v40 = vpop.f32.mrf.mxu0 }
 0x46f   :  { %1229 = vst.msk [vmem:[%s3431_s5 + $0x90] sm:$0xff] %vm1210_vm2, %v2979_v2  ;;  %1311 = vrot.lane.b32.xlu0 %v2979_v2, %s2537_s20 }
 0x470   :  { %v2187_v42 = vpop.f32.mrf.mxu0 }
 0x471   :  { %v2988_v21 = vadd.f32 %v2187_v42, %v2186_v40 }
 0x472   :  { %v2189_v6 = vpop.f32.mrf.mxu0 }
 0x473   :  { %1230 = vst.msk [vmem:[%s3431_s5 + $0x98] sm:$0xff] %vm1210_vm2, %v2988_v21  ;;  %1313 = vrot.lane.b32.xlu1 %v2988_v21, %s2537_s20 }
 0x474   :  { %v2190_v7 = vpop.f32.mrf.mxu0 }
 0x475   :  { %v2997_v8 = vadd.f32 %v2190_v7, %v2189_v6 }
 0x476   :  { %v2192_v9 = vpop.f32.mrf.mxu0 }
 0x477   :  { %1231 = vst.msk [vmem:[%s3431_s5 + $0xa0] sm:$0xff] %vm1210_vm2, %v2997_v8  ;;  %1315 = vrot.lane.b32.xlu0 %v2997_v8, %s2537_s20 }
 0x478   :  { %v2193_v10 = vpop.f32.mrf.mxu0 }
 0x479   :  { %v3006_v11 = vadd.f32 %v2193_v10, %v2192_v9 }
 0x47a   :  { %v2195_v13 = vpop.f32.mrf.mxu0 }
 0x47b   :  { %1232 = vst.msk [vmem:[%s3431_s5 + $0xa8] sm:$0xff] %vm1210_vm2, %v3006_v11  ;;  %1317 = vrot.lane.b32.xlu1 %v3006_v11, %s2537_s20 }
 0x47c   :  { %v2196_v14 = vpop.f32.mrf.mxu0 }
 0x47d   :  { %v3015_v16 = vadd.f32 %v2196_v14, %v2195_v13 }
 0x47e   :  { %v2198_v17 = vpop.f32.mrf.mxu0 }
 0x47f   :  { %1233 = vst.msk [vmem:[%s3431_s5 + $0xb0] sm:$0xff] %vm1210_vm2, %v3015_v16  ;;  %1319 = vrot.lane.b32.xlu0 %v3015_v16, %s2537_s20 }
 0x480   :  { %v2199_v19 = vpop.f32.mrf.mxu0 }
 0x481   :  { %v3024_v22 = vadd.f32 %v2199_v19, %v2198_v17 }
 0x482   :  { %v2201_v24 = vpop.f32.mrf.mxu0 }
 0x483   :  { %1234 = vst.msk [vmem:[%s3431_s5 + $0xb8] sm:$0xff] %vm1210_vm2, %v3024_v22  ;;  %1321 = vrot.lane.b32.xlu1 %v3024_v22, %s2537_s20 }
 0x484   :  { %v2202_v25 = vpop.f32.mrf.mxu0 }
 0x485   :  { %v3033_v27 = vadd.f32 %v2202_v25, %v2201_v24 }
 0x486   :  { %v2204_v29 = vpop.f32.mrf.mxu0 }
 0x487   :  { %1235 = vst.msk [vmem:[%s3431_s5 + $0xc0] sm:$0xff] %vm1210_vm2, %v3033_v27  ;;  %1323 = vrot.lane.b32.xlu0 %v3033_v27, %s2537_s20 }
 0x488   :  { %v2205_v32 = vpop.f32.mrf.mxu0 }
 0x489   :  { %v3042_v33 = vadd.f32 %v2205_v32, %v2204_v29 }
 0x48a   :  { %v2207_v35 = vpop.f32.mrf.mxu0 }
 0x48b   :  { %1236 = vst.msk [vmem:[%s3431_s5 + $0xc8] sm:$0xff] %vm1210_vm2, %v3042_v33  ;;  %1325 = vrot.lane.b32.xlu1 %v3042_v33, %s2537_s20 }
 0x48c   :  { %v2208_v36 = vpop.f32.mrf.mxu0 }
 0x48d   :  { %v3051_v38 = vadd.f32 %v2208_v36, %v2207_v35 }
 0x48e   :  { %v2210_v39 = vpop.f32.mrf.mxu0 }
 0x48f   :  { %1237 = vst.msk [vmem:[%s3431_s5 + $0xd0] sm:$0xff] %vm1210_vm2, %v3051_v38  ;;  %1327 = vrot.lane.b32.xlu0 %v3051_v38, %s2537_s20 }
 0x490   :  { %v2211_v61 = vpop.f32.mrf.mxu0 }
 0x491   :  { %v3060_v1 = vadd.f32 %v2211_v61, %v2210_v39 }
 0x492   :  { %v2213_v4 = vpop.f32.mrf.mxu0 }
 0x493   :  { %1238 = vst.msk [vmem:[%s3431_s5 + $0xd8] sm:$0xff] %vm1210_vm2, %v3060_v1  ;;  %1329 = vrot.lane.b32.xlu1 %v3060_v1, %s2537_s20 }
 0x494   :  { %v2214_v5 = vpop.f32.mrf.mxu0 }
 0x495   :  { %v3069_v30 = vadd.f32 %v2214_v5, %v2213_v4 }
 0x496   :  { %v2216_v41 = vpop.f32.mrf.mxu0 }
 0x497   :  { %1239 = vst.msk [vmem:[%s3431_s5 + $0xe0] sm:$0xff] %vm1210_vm2, %v3069_v30  ;;  %1331 = vrot.lane.b32.xlu0 %v3069_v30, %s2537_s20 }
 0x498   :  { %v2217_v43 = vpop.f32.mrf.mxu0 }
 0x499   :  { %v3078_v44 = vadd.f32 %v2217_v43, %v2216_v41  ;;  %v1276_v46 = vpop.permute.xlu0 %1275 }
 0x49a   :  { %1371 = vst.msk [vmem:[%s3432_s6] sm:$0xff] %vm1210_vm2, %v1276_v46  ;;  %v2219_v47 = vpop.f32.mrf.mxu0 }
 0x49b   :  { %1240 = vst.msk [vmem:[%s3431_s5 + $0xe8] sm:$0xff] %vm1210_vm2, %v3078_v44  ;;  %1333 = vrot.lane.b32.xlu1 %v3078_v44, %s2537_s20 }
 0x49c   :  { %v2220_v49 = vpop.f32.mrf.mxu0 }
 0x49d   :  { %v3091_v50 = vadd.f32 %v2220_v49, %v2219_v47  ;;  %v1278_v52 = vpop.permute.xlu0 %1277 }
 0x49e   :  { %1372 = vst.msk [vmem:[%s3432_s6 + $0x8] sm:$0xff] %vm1210_vm2, %v1278_v52  ;;  %v2222_v53 = vpop.f32.mrf.mxu0 }
 0x49f   :  { %1241 = vst.msk [vmem:[%s3431_s5 + $0xf0] sm:$0xff] %vm1210_vm2, %v3091_v50  ;;  %1335 = vrot.lane.b32.xlu0 %v3091_v50, %s2537_s20 }
 0x4a0   :  { %v2223_v55 = vpop.f32.mrf.mxu0 }
 0x4a1   :  { %v3104_v56 = vadd.f32 %v2223_v55, %v2222_v53  ;;  %v1280_v58 = vpop.permute.xlu1 %1279 }
 0x4a2   :  { %1373 = vst.msk [vmem:[%s3432_s6 + $0x10] sm:$0xff] %vm1210_vm2, %v1280_v58 }
 0x4a3   :  { %1242 = vst.msk [vmem:[%s3431_s5 + $0xf8] sm:$0xff] %vm1210_vm2, %v3104_v56  ;;  %2225 = vmatprep.subr.msk.mxu1 %vm1210_vm2, %v3104_v56  ;;  %1337 = vrot.lane.b32.xlu1 %v3104_v56, %s2537_s20 }
 0x4a4   :  { %2226 = vmatpush3.xpose.msk.msra.mxu1 %vm1210_vm2, %v2952_v54 }
 0x4a5   :  { %2227 = vmatprep.subr.msk.mxu1 %vm1210_vm2, %v3091_v50  ;;  %v1282_v60 = vpop.permute.xlu1 %1281 }
 0x4a6   :  { %1374 = vst.msk [vmem:[%s3432_s6 + $0x18] sm:$0xff] %vm1210_vm2, %v1282_v60 }
 0x4a8   :  { %2228 = vmatpush3.xpose.msk.msra.mxu1 %vm1210_vm2, %v2943_v51 }
 0x4a9   :  { %2229 = vmatprep.subr.msk.mxu1 %vm1210_vm2, %v3078_v44  ;;  %v1284_v63 = vpop.permute.xlu0 %1283 }
 0x4aa   :  { %1375 = vst.msk [vmem:[%s3432_s6 + $0x20] sm:$0xff] %vm1210_vm2, %v1284_v63 }
 0x4ac   :  { %2230 = vmatpush3.xpose.msk.msra.mxu1 %vm1210_vm2, %v2934_v48 }
 0x4ad   :  { %2231 = vmatprep.subr.msk.mxu1 %vm1210_vm2, %v3069_v30  ;;  %v1286_v0 = vpop.permute.xlu1 %1285 }
 0x4ae   :  { %1376 = vst.msk [vmem:[%s3432_s6 + $0x28] sm:$0xff] %vm1210_vm2, %v1286_v0 }
 0x4b0   :  { %2232 = vmatpush3.xpose.msk.msra.mxu1 %vm1210_vm2, %v2925_v45 }
 0x4b1   :  { %2233 = vmatprep.subr.msk.mxu1 %vm1210_vm2, %v3060_v1  ;;  %v1288_v40 = vpop.permute.xlu0 %1287 }
 0x4b2   :  { %1377 = vst.msk [vmem:[%s3432_s6 + $0x30] sm:$0xff] %vm1210_vm2, %v1288_v40 }
 0x4b4   :  { %2234 = vmatpush3.xpose.msk.msra.mxu1 %vm1210_vm2, %v2916_v20 }
 0x4b5   :  { %2235 = vmatprep.subr.msk.mxu1 %vm1210_vm2, %v3051_v38  ;;  %v1290_v42 = vpop.permute.xlu1 %1289 }
 0x4b6   :  { %1378 = vst.msk [vmem:[%s3432_s6 + $0x38] sm:$0xff] %vm1210_vm2, %v1290_v42 }
 0x4b8   :  { %2236 = vmatpush3.xpose.msk.msra.mxu1 %vm1210_vm2, %v2907_v28 }
 0x4b9   :  { %2237 = vmatprep.subr.msk.mxu1 %vm1210_vm2, %v3042_v33  ;;  %v1292_v6 = vpop.permute.xlu0 %1291 }
 0x4ba   :  { %1379 = vst.msk [vmem:[%s3432_s6 + $0x40] sm:$0xff] %vm1210_vm2, %v1292_v6 }
 0x4bc   :  { %2238 = vmatpush3.xpose.msk.msra.mxu1 %vm1210_vm2, %v2898_v3 }
 0x4bd   :  { %2239 = vmatprep.subr.msk.mxu1 %vm1210_vm2, %v3033_v27  ;;  %v1294_v7 = vpop.permute.xlu1 %1293 }
 0x4be   :  { %1380 = vst.msk [vmem:[%s3432_s6 + $0x48] sm:$0xff] %vm1210_vm2, %v1294_v7 }
 0x4c0   :  { %2240 = vmatpush3.xpose.msk.msra.mxu1 %vm1210_vm2, %v2889_v59 }
 0x4c1   :  { %2241 = vmatprep.subr.msk.mxu1 %vm1210_vm2, %v3024_v22  ;;  %v1296_v9 = vpop.permute.xlu0 %1295 }
 0x4c2   :  { %1381 = vst.msk [vmem:[%s3432_s6 + $0x50] sm:$0xff] %vm1210_vm2, %v1296_v9 }
 0x4c4   :  { %2242 = vmatpush3.xpose.msk.msra.mxu1 %vm1210_vm2, %v2880_v37 }
 0x4c5   :  { %2243 = vmatprep.subr.msk.mxu1 %vm1210_vm2, %v3015_v16  ;;  %v1298_v10 = vpop.permute.xlu1 %1297 }
 0x4c6   :  { %1382 = vst.msk [vmem:[%s3432_s6 + $0x58] sm:$0xff] %vm1210_vm2, %v1298_v10 }
 0x4c8   :  { %2244 = vmatpush3.xpose.msk.msra.mxu1 %vm1210_vm2, %v2871_v34 }
 0x4c9   :  { %2245 = vmatprep.subr.msk.mxu1 %vm1210_vm2, %v3006_v11  ;;  %v1300_v13 = vpop.permute.xlu0 %1299 }
 0x4ca   :  { %1383 = vst.msk [vmem:[%s3432_s6 + $0x60] sm:$0xff] %vm1210_vm2, %v1300_v13 }
 0x4cc   :  { %2246 = vmatpush3.xpose.msk.msra.mxu1 %vm1210_vm2, %v2862_v31 }
 0x4cd   :  { %2247 = vmatprep.subr.msk.mxu1 %vm1210_vm2, %v2997_v8  ;;  %v1302_v14 = vpop.permute.xlu1 %1301 }
 0x4ce   :  { %1384 = vst.msk [vmem:[%s3432_s6 + $0x68] sm:$0xff] %vm1210_vm2, %v1302_v14 }
 0x4d0   :  { %2248 = vmatpush3.xpose.msk.msra.mxu1 %vm1210_vm2, %v2853_v26 }
 0x4d1   :  { %2249 = vmatprep.subr.msk.mxu1 %vm1210_vm2, %v2988_v21  ;;  %v1304_v17 = vpop.permute.xlu0 %1303 }
 0x4d2   :  { %1385 = vst.msk [vmem:[%s3432_s6 + $0x70] sm:$0xff] %vm1210_vm2, %v1304_v17 }
 0x4d4   :  { %2250 = vmatpush3.xpose.msk.msra.mxu1 %vm1210_vm2, %v2844_v23 }
 0x4d5   :  { %2251 = vmatprep.subr.msk.mxu1 %vm1210_vm2, %v2979_v2  ;;  %v1306_v19 = vpop.permute.xlu1 %1305 }
 0x4d6   :  { %1386 = vst.msk [vmem:[%s3432_s6 + $0x78] sm:$0xff] %vm1210_vm2, %v1306_v19 }
 0x4d8   :  { %2252 = vmatpush3.xpose.msk.msra.mxu1 %vm1210_vm2, %v2835_v18 }
 0x4d9   :  { %2253 = vmatprep.subr.msk.mxu1 %vm1210_vm2, %v2970_v62  ;;  %v1308_v24 = vpop.permute.xlu0 %1307 }
 0x4da   :  { %1387 = vst.msk [vmem:[%s3432_s6 + $0x80] sm:$0xff] %vm1210_vm2, %v1308_v24 }
 0x4dc   :  { %2254 = vmatpush3.xpose.msk.msra.mxu1 %vm1210_vm2, %v2826_v15 }
 0x4dd   :  { %v1310_v25 = vpop.permute.xlu1 %1309  ;;  %2255 = vmatprep.subr.msk.mxu1 %vm1210_vm2, %v2961_v57 }
 0x4de   :  { %1388 = vst.msk [vmem:[%s3432_s6 + $0x88] sm:$0xff] %vm1210_vm2, %v1310_v25 }
 0x4e0   :  { %2256 = vmatpush3.xpose.msk.msra.mxu1 %vm1210_vm2, %v2815_v12 }
 0x4e1   :  { %v1312_v29 = vpop.permute.xlu0 %1311 }
 0x4e2   :  { %1389 = vst.msk [vmem:[%s3432_s6 + $0x90] sm:$0xff] %vm1210_vm2, %v1312_v29 }
 0x4e3   :  { %2258 = vmatmul.mubr.msk.f32.vlgmr.msra.gmra.mxu1 %vm1210_vm2, %v2815_v12 }
 0x4e4   :  { %2259 = vmatprep.mubr.msk.f32.mxu1 %vm1210_vm2, %v2826_v15 }
 0x4e5   :  { %v1314_v32 = vpop.permute.xlu1 %1313 }
 0x4e6   :  { %1390 = vst.msk [vmem:[%s3432_s6 + $0x98] sm:$0xff] %vm1210_vm2, %v1314_v32 }
 0x4e7   :  { %2260 = vmatmul.mubr.msk.f32.gmra.mxu1 %vm1210_vm2, %v2826_v15 }
 0x4e8   :  { %2261 = vmatprep.mubr.msk.f32.mxu1 %vm1210_vm2, %v2835_v18 }
 0x4e9   :  { %v1316_v35 = vpop.permute.xlu0 %1315 }
 0x4ea   :  { %1391 = vst.msk [vmem:[%s3432_s6 + $0xa0] sm:$0xff] %vm1210_vm2, %v1316_v35 }
 0x4eb   :  { %2262 = vmatmul.mubr.msk.f32.gmra.mxu1 %vm1210_vm2, %v2835_v18 }
 0x4ec   :  { %2263 = vmatprep.mubr.msk.f32.mxu1 %vm1210_vm2, %v2844_v23 }
 0x4ed   :  { %v1318_v12 = vpop.permute.xlu1 %1317 }
 0x4ee   :  { %1392 = vst.msk [vmem:[%s3432_s6 + $0xa8] sm:$0xff] %vm1210_vm2, %v1318_v12 }
 0x4ef   :  { %2264 = vmatmul.mubr.msk.f32.gmra.mxu1 %vm1210_vm2, %v2844_v23 }
 0x4f0   :  { %2265 = vmatprep.mubr.msk.f32.mxu1 %vm1210_vm2, %v2853_v26 }
 0x4f1   :  { %v1320_v15 = vpop.permute.xlu0 %1319 }
 0x4f2   :  { %1393 = vst.msk [vmem:[%s3432_s6 + $0xb0] sm:$0xff] %vm1210_vm2, %v1320_v15 }
 0x4f3   :  { %2266 = vmatmul.mubr.msk.f32.gmra.mxu1 %vm1210_vm2, %v2853_v26 }
 0x4f4   :  { %2267 = vmatprep.mubr.msk.f32.mxu1 %vm1210_vm2, %v2862_v31 }
 0x4f5   :  { %v1322_v18 = vpop.permute.xlu1 %1321 }
 0x4f6   :  { %1394 = vst.msk [vmem:[%s3432_s6 + $0xb8] sm:$0xff] %vm1210_vm2, %v1322_v18 }
 0x4f7   :  { %2268 = vmatmul.mubr.msk.f32.gmra.mxu1 %vm1210_vm2, %v2862_v31 }
 0x4f8   :  { %2269 = vmatprep.mubr.msk.f32.mxu1 %vm1210_vm2, %v2871_v34 }
 0x4f9   :  { %v1324_v23 = vpop.permute.xlu0 %1323 }
 0x4fa   :  { %1395 = vst.msk [vmem:[%s3432_s6 + $0xc0] sm:$0xff] %vm1210_vm2, %v1324_v23 }
 0x4fb   :  { %2270 = vmatmul.mubr.msk.f32.gmra.mxu1 %vm1210_vm2, %v2871_v34 }
 0x4fc   :  { %2271 = vmatprep.mubr.msk.f32.mxu1 %vm1210_vm2, %v2880_v37 }
 0x4fd   :  { %v1326_v26 = vpop.permute.xlu1 %1325 }
 0x4fe   :  { %1396 = vst.msk [vmem:[%s3432_s6 + $0xc8] sm:$0xff] %vm1210_vm2, %v1326_v26 }
 0x4ff   :  { %2272 = vmatmul.mubr.msk.f32.gmra.mxu1 %vm1210_vm2, %v2880_v37 }
 0x500   :  { %2273 = vmatprep.mubr.msk.f32.mxu1 %vm1210_vm2, %v2889_v59 }
 0x501   :  { %v1328_v31 = vpop.permute.xlu0 %1327 }
 0x502   :  { %1397 = vst.msk [vmem:[%s3432_s6 + $0xd0] sm:$0xff] %vm1210_vm2, %v1328_v31 }
 0x503   :  { %2274 = vmatmul.mubr.msk.f32.gmra.mxu1 %vm1210_vm2, %v2889_v59 }
 0x504   :  { %2275 = vmatprep.mubr.msk.f32.mxu1 %vm1210_vm2, %v2898_v3 }
 0x505   :  { %v1330_v34 = vpop.permute.xlu1 %1329 }
 0x506   :  { %1398 = vst.msk [vmem:[%s3432_s6 + $0xd8] sm:$0xff] %vm1210_vm2, %v1330_v34 }
 0x507   :  { %2276 = vmatmul.mubr.msk.f32.gmra.mxu1 %vm1210_vm2, %v2898_v3 }
 0x508   :  { %2277 = vmatprep.mubr.msk.f32.mxu1 %vm1210_vm2, %v2907_v28 }
 0x509   :  { %v1332_v37 = vpop.permute.xlu0 %1331 }
 0x50a   :  { %1399 = vst.msk [vmem:[%s3432_s6 + $0xe0] sm:$0xff] %vm1210_vm2, %v1332_v37 }
 0x50b   :  { %2278 = vmatmul.mubr.msk.f32.gmra.mxu1 %vm1210_vm2, %v2907_v28 }
 0x50c   :  { %2279 = vmatprep.mubr.msk.f32.mxu1 %vm1210_vm2, %v2916_v20 }
 0x50d   :  { %v1334_v59 = vpop.permute.xlu1 %1333 }
 0x50e   :  { %1400 = vst.msk [vmem:[%s3432_s6 + $0xe8] sm:$0xff] %vm1210_vm2, %v1334_v59 }
 0x50f   :  { %2280 = vmatmul.mubr.msk.f32.gmra.mxu1 %vm1210_vm2, %v2916_v20 }
 0x510   :  { %2281 = vmatprep.mubr.msk.f32.mxu1 %vm1210_vm2, %v2925_v45 }
 0x511   :  { %v1336_v3 = vpop.permute.xlu0 %1335 }
 0x512   :  { %1401 = vst.msk [vmem:[%s3432_s6 + $0xf0] sm:$0xff] %vm1210_vm2, %v1336_v3 }
 0x513   :  { %2282 = vmatmul.mubr.msk.f32.gmra.mxu1 %vm1210_vm2, %v2925_v45 }
 0x514   :  { %2283 = vmatprep.mubr.msk.f32.mxu1 %vm1210_vm2, %v2934_v48 }
 0x515   :  { %v1338_v28 = vpop.permute.xlu1 %1337 }
 0x516   :  { %1402 = vst.msk [vmem:[%s3432_s6 + $0xf8] sm:$0xff] %vm1210_vm2, %v1338_v28  ;;  %s2538_s6 = smov [#allocation5]  }
 0x517   :  { %2284 = vmatmul.mubr.msk.f32.gmra.mxu1 %vm1210_vm2, %v2934_v48  ;;  %s1793_s1 = sshll.u32 %s2538_s6, 4  ;;  %s1794_s1 = int_to_ptr.vmem [resolvable:$true] %s1793_s1 }
 0x518   :  { %2285 = vmatprep.mubr.msk.f32.mxu1 %vm1210_vm2, %v2943_v51  ;;  %s2510_s11 = scalar_lea.vmem %s1794_s1, 8192  ;;  %p2515_p6 = scmp.lt.s32.totalorder %s1794_s1, %s1794_s1 }
 0x519   :  { %p2511_p5 = scmp.ne.s32.totalorder %s1794_s1, %s2510_s11  ;;  %p2516_p7 = scmp.lt.s32.totalorder %s2510_s11, %s2510_s11 }
 0x51b   :  { %2286 = vmatmul.mubr.msk.f32.gmra.mxu1 %vm1210_vm2, %v2943_v51  ;;  %p2517_p8 = por %p2516_p7, %p2515_p6 }
 0x51c   :  { %2287 = vmatprep.mubr.msk.f32.mxu1 %vm1210_vm2, %v2952_v54 }
 0x51d   :  { %p2518_p9 = pnand %p2517_p8, %p2511_p5 }
 0x51f   :  { %2288 = vmatmul.mubr.msk.f32.gmra.mxu1 %vm1210_vm2, %v2952_v54 }
 0x520   :  { %2289 = vmatprep.mubr.msk.f32.mxu1 %vm1210_vm2, %v2961_v57 }
 0x523   :  { %2290 = vmatmul.mubr.msk.f32.gmra.mxu1 %vm1210_vm2, %v2961_v57 }
 0x524   :  { %2291 = vmatprep.mubr.msk.f32.mxu1 %vm1210_vm2, %v2970_v62 }
 0x527   :  { %2292 = vmatmul.mubr.msk.f32.gmra.mxu1 %vm1210_vm2, %v2970_v62 }
 0x528   :  { %2293 = vmatprep.mubr.msk.f32.mxu1 %vm1210_vm2, %v2979_v2 }
 0x52b   :  { %2294 = vmatmul.mubr.msk.f32.gmra.mxu1 %vm1210_vm2, %v2979_v2 }
 0x52c   :  { %2295 = vmatprep.mubr.msk.f32.mxu1 %vm1210_vm2, %v2988_v21 }
 0x52f   :  { %2296 = vmatmul.mubr.msk.f32.gmra.mxu1 %vm1210_vm2, %v2988_v21 }
 0x530   :  { %2297 = vmatprep.mubr.msk.f32.mxu1 %vm1210_vm2, %v2997_v8 }
 0x533   :  { %2298 = vmatmul.mubr.msk.f32.gmra.mxu1 %vm1210_vm2, %v2997_v8 }
 0x534   :  { %2299 = vmatprep.mubr.msk.f32.mxu1 %vm1210_vm2, %v3006_v11 }
 0x537   :  { %2300 = vmatmul.mubr.msk.f32.gmra.mxu1 %vm1210_vm2, %v3006_v11 }
 0x538   :  { %2301 = vmatprep.mubr.msk.f32.mxu1 %vm1210_vm2, %v3015_v16 }
 0x53b   :  { %2302 = vmatmul.mubr.msk.f32.gmra.mxu1 %vm1210_vm2, %v3015_v16 }
 0x53c   :  { %2303 = vmatprep.mubr.msk.f32.mxu1 %vm1210_vm2, %v3024_v22 }
 0x53f   :  { %2304 = vmatmul.mubr.msk.f32.gmra.mxu1 %vm1210_vm2, %v3024_v22 }
 0x540   :  { %2305 = vmatprep.mubr.msk.f32.mxu1 %vm1210_vm2, %v3033_v27 }
 0x543   :  { %2306 = vmatmul.mubr.msk.f32.gmra.mxu1 %vm1210_vm2, %v3033_v27 }
 0x544   :  { %2307 = vmatprep.mubr.msk.f32.mxu1 %vm1210_vm2, %v3042_v33 }
 0x547   :  { %2308 = vmatmul.mubr.msk.f32.gmra.mxu1 %vm1210_vm2, %v3042_v33 }
 0x548   :  { %2309 = vmatprep.mubr.msk.f32.mxu1 %vm1210_vm2, %v3051_v38 }
 0x54b   :  { %2310 = vmatmul.mubr.msk.f32.gmra.mxu1 %vm1210_vm2, %v3051_v38 }
 0x54c   :  { %2311 = vmatprep.mubr.msk.f32.mxu1 %vm1210_vm2, %v3060_v1 }
 0x54f   :  { %2312 = vmatmul.mubr.msk.f32.gmra.mxu1 %vm1210_vm2, %v3060_v1 }
 0x550   :  { %2313 = vmatprep.mubr.msk.f32.mxu1 %vm1210_vm2, %v3069_v30 }
 0x553   :  { %2314 = vmatmul.mubr.msk.f32.gmra.mxu1 %vm1210_vm2, %v3069_v30 }
 0x554   :  { %2315 = vmatprep.mubr.msk.f32.mxu1 %vm1210_vm2, %v3078_v44 }
 0x557   :  { %2316 = vmatmul.mubr.msk.f32.gmra.mxu1 %vm1210_vm2, %v3078_v44 }
 0x558   :  { %2317 = vmatprep.mubr.msk.f32.mxu1 %vm1210_vm2, %v3091_v50 }
 0x55b   :  { %2318 = vmatmul.mubr.msk.f32.gmra.mxu1 %vm1210_vm2, %v3091_v50 }
 0x55c   :  { %2319 = vmatprep.mubr.msk.f32.mxu1 %vm1210_vm2, %v3104_v56 }
 0x55f   :  { %2320 = vmatmul.mubr.msk.f32.gmra.mxu1 %vm1210_vm2, %v3104_v56 }
 0x5a3   :  { %v1533_v20 = vpop.f32.mrf.mxu1 }
 0x5a4   :  { %1724 = vst [vmem:[#allocation5] sm:$0xff] %v1533_v20 }
 0x5a5   :  { %v1535_v45 = vpop.f32.mrf.mxu1 }
 0x5a6   :  { %1725 = vst [vmem:[#allocation5 + $0x8] sm:$0xff] %v1535_v45 }
 0x5a7   :  { %v1539_v48 = vpop.f32.mrf.mxu1 }
 0x5a8   :  { %1726 = vst [vmem:[#allocation5 + $0x10] sm:$0xff] %v1539_v48 }
 0x5a9   :  { %v1541_v51 = vpop.f32.mrf.mxu1 }
 0x5aa   :  { %1727 = vst [vmem:[#allocation5 + $0x18] sm:$0xff] %v1541_v51 }
 0x5ab   :  { %v1545_v54 = vpop.f32.mrf.mxu1 }
 0x5ac   :  { %1728 = vst [vmem:[#allocation5 + $0x20] sm:$0xff] %v1545_v54 }
 0x5ad   :  { %v1547_v57 = vpop.f32.mrf.mxu1 }
 0x5ae   :  { %1729 = vst [vmem:[#allocation5 + $0x28] sm:$0xff] %v1547_v57 }
 0x5af   :  { %v1551_v62 = vpop.f32.mrf.mxu1 }
 0x5b0   :  { %1730 = vst [vmem:[#allocation5 + $0x30] sm:$0xff] %v1551_v62 }
 0x5b1   :  { %v1553_v2 = vpop.f32.mrf.mxu1 }
 0x5b2   :  { %1731 = vst [vmem:[#allocation5 + $0x38] sm:$0xff] %v1553_v2 }
 0x5b3   :  { %v1557_v21 = vpop.f32.mrf.mxu1 }
 0x5b4   :  { %1732 = vst [vmem:[#allocation5 + $0x40] sm:$0xff] %v1557_v21 }
 0x5b5   :  { %v1559_v8 = vpop.f32.mrf.mxu1 }
 0x5b6   :  { %1733 = vst [vmem:[#allocation5 + $0x48] sm:$0xff] %v1559_v8 }
 0x5b7   :  { %v1563_v11 = vpop.f32.mrf.mxu1 }
 0x5b8   :  { %1734 = vst [vmem:[#allocation5 + $0x50] sm:$0xff] %v1563_v11 }
 0x5b9   :  { %v1565_v16 = vpop.f32.mrf.mxu1 }
 0x5ba   :  { %1735 = vst [vmem:[#allocation5 + $0x58] sm:$0xff] %v1565_v16 }
 0x5bb   :  { %v1569_v22 = vpop.f32.mrf.mxu1 }
 0x5bc   :  { %1736 = vst [vmem:[#allocation5 + $0x60] sm:$0xff] %v1569_v22 }
 0x5bd   :  { %v1571_v27 = vpop.f32.mrf.mxu1 }
 0x5be   :  { %1737 = vst [vmem:[#allocation5 + $0x68] sm:$0xff] %v1571_v27 }
 0x5bf   :  { %v1575_v33 = vpop.f32.mrf.mxu1 }
 0x5c0   :  { %1738 = vst [vmem:[#allocation5 + $0x70] sm:$0xff] %v1575_v33 }
 0x5c1   :  { %v1577_v36 = vpop.f32.mrf.mxu1 }
 0x5c2   :  { %1739 = vst [vmem:[#allocation5 + $0x78] sm:$0xff] %v1577_v36 }
 0x5c3   :  { %v1581_v38 = vpop.f32.mrf.mxu1 }
 0x5c4   :  { %1740 = vst [vmem:[#allocation5 + $0x80] sm:$0xff] %v1581_v38 }
 0x5c5   :  { %v1583_v39 = vpop.f32.mrf.mxu1 }
 0x5c6   :  { %1741 = vst [vmem:[#allocation5 + $0x88] sm:$0xff] %v1583_v39 }
 0x5c7   :  { %v1587_v61 = vpop.f32.mrf.mxu1 }
 0x5c8   :  { %1742 = vst [vmem:[#allocation5 + $0x90] sm:$0xff] %v1587_v61 }
 0x5c9   :  { %v1589_v1 = vpop.f32.mrf.mxu1 }
 0x5ca   :  { %1743 = vst [vmem:[#allocation5 + $0x98] sm:$0xff] %v1589_v1 }
 0x5cb   :  { %v1593_v4 = vpop.f32.mrf.mxu1 }
 0x5cc   :  { %1744 = vst [vmem:[#allocation5 + $0xa0] sm:$0xff] %v1593_v4 }
 0x5cd   :  { %v1595_v5 = vpop.f32.mrf.mxu1 }
 0x5ce   :  { %1745 = vst [vmem:[#allocation5 + $0xa8] sm:$0xff] %v1595_v5 }
 0x5cf   :  { %v1599_v30 = vpop.f32.mrf.mxu1 }
 0x5d0   :  { %1746 = vst [vmem:[#allocation5 + $0xb0] sm:$0xff] %v1599_v30 }
 0x5d1   :  { %v1601_v41 = vpop.f32.mrf.mxu1 }
 0x5d2   :  { %1747 = vst [vmem:[#allocation5 + $0xb8] sm:$0xff] %v1601_v41 }
 0x5d3   :  { %v1605_v43 = vpop.f32.mrf.mxu1 }
 0x5d4   :  { %1748 = vst [vmem:[#allocation5 + $0xc0] sm:$0xff] %v1605_v43 }
 0x5d5   :  { %v1607_v44 = vpop.f32.mrf.mxu1 }
 0x5d6   :  { %1749 = vst [vmem:[#allocation5 + $0xc8] sm:$0xff] %v1607_v44 }
 0x5d7   :  { %v1611_v46 = vpop.f32.mrf.mxu1 }
 0x5d8   :  { %1750 = vst [vmem:[#allocation5 + $0xd0] sm:$0xff] %v1611_v46 }
 0x5d9   :  { %v1613_v47 = vpop.f32.mrf.mxu1 }
 0x5da   :  { %1751 = vst [vmem:[#allocation5 + $0xd8] sm:$0xff] %v1613_v47 }
 0x5db   :  { %v1617_v49 = vpop.f32.mrf.mxu1 }
 0x5dc   :  { %1752 = vst [vmem:[#allocation5 + $0xe0] sm:$0xff] %v1617_v49 }
 0x5dd   :  { %v1619_v50 = vpop.f32.mrf.mxu1 }
 0x5de   :  { %1753 = vst [vmem:[#allocation5 + $0xe8] sm:$0xff] %v1619_v50 }
 0x5df   :  { %v1623_v52 = vpop.f32.mrf.mxu1 }
 0x5e0   :  { %1754 = vst [vmem:[#allocation5 + $0xf0] sm:$0xff] %v1623_v52 }
 0x5e1   :  { %v1625_v53 = vpop.f32.mrf.mxu1 }
 0x5e2   :  { %1755 = vst [vmem:[#allocation5 + $0xf8] sm:$0xff] %v1625_v53 }
 0x5e3   :  { %v1629_v55 = vpop.f32.mrf.mxu1 }
 0x5e4   :  { %1756 = vst [vmem:[#allocation5 + $0x100] sm:$0xff] %v1629_v55 }
 0x5e5   :  { %v1631_v56 = vpop.f32.mrf.mxu1 }
 0x5e6   :  { %1757 = vst [vmem:[#allocation5 + $0x108] sm:$0xff] %v1631_v56 }
 0x5e7   :  { %v1635_v58 = vpop.f32.mrf.mxu1 }
 0x5e8   :  { %1758 = vst [vmem:[#allocation5 + $0x110] sm:$0xff] %v1635_v58 }
 0x5e9   :  { %v1637_v60 = vpop.f32.mrf.mxu1 }
 0x5ea   :  { %1759 = vst [vmem:[#allocation5 + $0x118] sm:$0xff] %v1637_v60 }
 0x5eb   :  { %v1641_v63 = vpop.f32.mrf.mxu1 }
 0x5ec   :  { %1760 = vst [vmem:[#allocation5 + $0x120] sm:$0xff] %v1641_v63 }
 0x5ed   :  { %v1643_v0 = vpop.f32.mrf.mxu1 }
 0x5ee   :  { %1761 = vst [vmem:[#allocation5 + $0x128] sm:$0xff] %v1643_v0 }
 0x5ef   :  { %v1647_v40 = vpop.f32.mrf.mxu1 }
 0x5f0   :  { %1762 = vst [vmem:[#allocation5 + $0x130] sm:$0xff] %v1647_v40 }
 0x5f1   :  { %v1649_v42 = vpop.f32.mrf.mxu1 }
 0x5f2   :  { %1763 = vst [vmem:[#allocation5 + $0x138] sm:$0xff] %v1649_v42 }
 0x5f3   :  { %v1653_v6 = vpop.f32.mrf.mxu1 }
 0x5f4   :  { %1764 = vst [vmem:[#allocation5 + $0x140] sm:$0xff] %v1653_v6 }
 0x5f5   :  { %v1655_v7 = vpop.f32.mrf.mxu1 }
 0x5f6   :  { %1765 = vst [vmem:[#allocation5 + $0x148] sm:$0xff] %v1655_v7 }
 0x5f7   :  { %v1659_v9 = vpop.f32.mrf.mxu1 }
 0x5f8   :  { %1766 = vst [vmem:[#allocation5 + $0x150] sm:$0xff] %v1659_v9 }
 0x5f9   :  { %v1661_v10 = vpop.f32.mrf.mxu1 }
 0x5fa   :  { %1767 = vst [vmem:[#allocation5 + $0x158] sm:$0xff] %v1661_v10 }
 0x5fb   :  { %v1665_v13 = vpop.f32.mrf.mxu1 }
 0x5fc   :  { %1768 = vst [vmem:[#allocation5 + $0x160] sm:$0xff] %v1665_v13 }
 0x5fd   :  { %v1667_v14 = vpop.f32.mrf.mxu1 }
 0x5fe   :  { %1769 = vst [vmem:[#allocation5 + $0x168] sm:$0xff] %v1667_v14 }
 0x5ff   :  { %v1671_v17 = vpop.f32.mrf.mxu1 }
 0x600   :  { %1770 = vst [vmem:[#allocation5 + $0x170] sm:$0xff] %v1671_v17 }
 0x601   :  { %v1673_v19 = vpop.f32.mrf.mxu1 }
 0x602   :  { %1771 = vst [vmem:[#allocation5 + $0x178] sm:$0xff] %v1673_v19 }
 0x603   :  { %v1677_v24 = vpop.f32.mrf.mxu1 }
 0x604   :  { %1772 = vst [vmem:[#allocation5 + $0x180] sm:$0xff] %v1677_v24 }
 0x605   :  { %v1679_v25 = vpop.f32.mrf.mxu1 }
 0x606   :  { %1773 = vst [vmem:[#allocation5 + $0x188] sm:$0xff] %v1679_v25 }
 0x607   :  { %v1683_v29 = vpop.f32.mrf.mxu1 }
 0x608   :  { %1774 = vst [vmem:[#allocation5 + $0x190] sm:$0xff] %v1683_v29 }
 0x609   :  { %v1685_v32 = vpop.f32.mrf.mxu1 }
 0x60a   :  { %1775 = vst [vmem:[#allocation5 + $0x198] sm:$0xff] %v1685_v32 }
 0x60b   :  { %v1689_v35 = vpop.f32.mrf.mxu1 }
 0x60c   :  { %1776 = vst [vmem:[#allocation5 + $0x1a0] sm:$0xff] %v1689_v35 }
 0x60d   :  { %v1691_v12 = vpop.f32.mrf.mxu1 }
 0x60e   :  { %1777 = vst [vmem:[#allocation5 + $0x1a8] sm:$0xff] %v1691_v12 }
 0x60f   :  { %v1695_v15 = vpop.f32.mrf.mxu1 }
 0x610   :  { %1778 = vst [vmem:[#allocation5 + $0x1b0] sm:$0xff] %v1695_v15 }
 0x611   :  { %v1697_v18 = vpop.f32.mrf.mxu1 }
 0x612   :  { %1779 = vst [vmem:[#allocation5 + $0x1b8] sm:$0xff] %v1697_v18 }
 0x613   :  { %v1701_v23 = vpop.f32.mrf.mxu1 }
 0x614   :  { %1780 = vst [vmem:[#allocation5 + $0x1c0] sm:$0xff] %v1701_v23 }
 0x615   :  { %v1703_v26 = vpop.f32.mrf.mxu1 }
 0x616   :  { %1781 = vst [vmem:[#allocation5 + $0x1c8] sm:$0xff] %v1703_v26 }
 0x617   :  { %v1707_v31 = vpop.f32.mrf.mxu1 }
 0x618   :  { %1782 = vst [vmem:[#allocation5 + $0x1d0] sm:$0xff] %v1707_v31 }
 0x619   :  { %v1709_v34 = vpop.f32.mrf.mxu1 }
 0x61a   :  { %1783 = vst [vmem:[#allocation5 + $0x1d8] sm:$0xff] %v1709_v34 }
 0x61b   :  { %v1713_v37 = vpop.f32.mrf.mxu1 }
 0x61c   :  { %1784 = vst [vmem:[#allocation5 + $0x1e0] sm:$0xff] %v1713_v37 }
 0x61d   :  { %v1715_v59 = vpop.f32.mrf.mxu1 }
 0x61e   :  { %1785 = vst [vmem:[#allocation5 + $0x1e8] sm:$0xff] %v1715_v59 }
 0x61f   :  { %v1719_v3 = vpop.f32.mrf.mxu1 }
 0x620   :  { %1786 = vst [vmem:[#allocation5 + $0x1f0] sm:$0xff] %v1719_v3 }
 0x621   :  { %v1721_v28 = vpop.f32.mrf.mxu1 }
 0x622   :  { %1787 = vst [vmem:[#allocation5 + $0x1f8] sm:$0xff] %v1721_v28 }
 0x623   :  { %2521 = shalt.err (!%p2518_p9)
}
 0x624   :  { %s2539_s5 = smov 256   ;;  %s2540_s20 = smov 16  }
 0x625   :  { %1799 = dma.vmem_to_hbm [thread:$0]  %s1794_s1, 8192, %s3430_s4, [#allocation4], %s2539_s5, %s2539_s5, %s2540_s20  }
 0x626   :  { %2532 = dma.done.wait [#allocation4], 8192  }
 0x627   :  { %2533 = vsyncadd [#allocation4], 4294959104 }
 0x628   :  { %1811 = vsyncpa [#allocation3], 1 }
 0x629   :  { %1812 = vsyncpa [#allocation4], 1 }

</bundles_post_ra>
